<compile_context>
chip_gen: v6e
topology: v6e:2x2x1
jax: 0.10.0
libtpu: 0.0.40
codegen_flags: <defaults>
</compile_context>

<pallas_src>
import functools

import jax
import jax.numpy as jnp
import numpy as np
from jax import lax
from jax.experimental import pallas as pl
from jax.experimental.pallas import tpu as pltpu

K1_PAD, K2_PAD = 32, 256  # padded im2col K (+1 bias row) for conv1 / conv2


# ----------------------------- Pallas kernels ------------------------------ #
def conv_pool_relu_kernel(p_ref, w_ref, o_ref, *, width):
    """conv-as-matmul (+bias folded into K) + 2x2 maxpool + ReLU, images in lanes.

    p_ref : (Kpad, 4*width) bf16   lanes = [offset j][pooled pos p][image i]
    w_ref : (C_out, Kpad)   bf16   column K_real holds the bias
    o_ref : (C_out, width)  bf16   width = pooled * bb  (multiple of 128)
    """
    w = w_ref[...]
    m = None
    for j in range(4):                       # 4 pooling-window offsets
        part = jnp.dot(w, p_ref[:, j * width:(j + 1) * width],
                       preferred_element_type=jnp.float32)
        m = part if m is None else jnp.maximum(m, part)
    o_ref[...] = jnp.maximum(m, 0.0).astype(o_ref.dtype)


def conv2_fc_kernel(p_ref, w2_ref, fw1p_ref, fb1_ref, fw2_ref, fb2_ref, o_ref,
                    *, bb, pooled):
    """conv2 + pool + ReLU + fc1 + ReLU + fc2 + log_softmax, fully fused.

    p_ref  : (K2_PAD, 4*pooled*bb) bf16
    w2_ref : (20, K2_PAD) bf16 (bias folded into column 250)
    fw1p_ref : (pooled, 50, 20) f32  -- fc1 weights grouped per spatial position
    fb1_ref  : (50, 1) f32,  fw2_ref : (10, 50) f32,  fb2_ref : (10, 1) f32
    o_ref  : (10, bb) f32  -- log-probs, transposed (class-major, lane-dense)
    """
    width = pooled * bb
    w2 = w2_ref[...]
    r = None
    for j in range(4):
        part = jnp.dot(w2, p_ref[:, j * width:(j + 1) * width],
                       preferred_element_type=jnp.float32)
        r = part if r is None else jnp.maximum(r, part)
    r = jnp.maximum(r, 0.0)                  # (20, pooled*bb) == flat^T grouped by p
    # TODO(synk): Dropout2d / dropout are identity (inference semantics).

    # fc1: h^T[o,i] = sum_{c,p} fw1[o, c*16+p] * r[c, p*bb+i]
    h = None
    for p in range(pooled):
        part = jnp.dot(fw1p_ref[p], r[:, p * bb:(p + 1) * bb],
                       preferred_element_type=jnp.float32)
        h = part if h is None else h + part
    h = jnp.maximum(h + fb1_ref[...], 0.0)                   # (50, bb)

    logits = jnp.dot(fw2_ref[...], h,
                     preferred_element_type=jnp.float32) + fb2_ref[...]  # (10, bb)
    mx = jnp.max(logits, axis=0, keepdims=True)
    s = logits - mx
    o_ref[...] = s - jnp.log(jnp.sum(jnp.exp(s), axis=0, keepdims=True))


# ----------------------------- Pallas wrappers ----------------------------- #
def conv_pool_relu(p2d, w, *, c_out, pooled, bb, G):
    kpad = w.shape[1]
    L = 4 * pooled * bb
    kernel = functools.partial(conv_pool_relu_kernel, width=pooled * bb)
    return pl.pallas_call(
        kernel,
        out_shape=jax.ShapeDtypeStruct((c_out, G * pooled * bb), jnp.bfloat16),
        grid=(G,),
        in_specs=[
            pl.BlockSpec((kpad, L), lambda i: (i, 0)),
            pl.BlockSpec((c_out, kpad), lambda i: (0, 0)),
        ],
        out_specs=pl.BlockSpec((c_out, pooled * bb), lambda i: (0, i)),
        compiler_params=pltpu.CompilerParams(
            dimension_semantics=("parallel",),
            vmem_limit_bytes=32 * 1024 * 1024,
        ),
    )(p2d, w)


def conv2_fc(p2d, w2, fw1p, fb1, fw2, fb2, *, pooled, bb, G):
    L = 4 * pooled * bb
    kernel = functools.partial(conv2_fc_kernel, bb=bb, pooled=pooled)
    return pl.pallas_call(
        kernel,
        out_shape=jax.ShapeDtypeStruct((10, G * bb), jnp.float32),
        grid=(G,),
        in_specs=[
            pl.BlockSpec((K2_PAD, L), lambda i: (i, 0)),
            pl.BlockSpec((20, K2_PAD), lambda i: (0, 0)),
            pl.BlockSpec((pooled, 50, 20), lambda i: (0, 0, 0)),
            pl.BlockSpec((50, 1), lambda i: (0, 0)),
            pl.BlockSpec((10, 50), lambda i: (0, 0)),
            pl.BlockSpec((10, 1), lambda i: (0, 0)),
        ],
        out_specs=pl.BlockSpec((10, bb), lambda i: (0, i)),
        compiler_params=pltpu.CompilerParams(
            dimension_semantics=("parallel",),
            vmem_limit_bytes=32 * 1024 * 1024,
        ),
    )(p2d, w2, fw1p, fb1, fw2, fb2)


# ------------------------------- glue (JAX) -------------------------------- #
def build_pool_patches_folded(x, k, kpad, bb):
    """im2col for a valid k x k conv, pooling-offset grouped, images folded in lanes.

    x : (N, C, H, W) (N divisible by bb) -> (G*kpad, 4*Hp*Wp*bb), pooled=Hp*Wp
    Within group g, row c*k*k + di*k + dj, lane j*(Hp*Wp*bb) + p*bb + i holds the
    patch value feeding conv output (2*ph+a, 2*pw+b) of image g*bb+i, with
    j = 2*a+b and p = ph*Wp+pw.  Row C*k*k is all-ones (bias row); rest zero-pad.
    """
    N, C, H, W = x.shape
    Ho, Wo = H - k + 1, W - k + 1
    Hp, Wp = Ho // 2, Wo // 2
    pooled = Hp * Wp
    G = N // bb
    K = C * k * k
    offset_blocks = []
    for a in range(2):
        for b in range(2):
            cols = []
            for di in range(k):
                for dj in range(k):
                    r0, c0 = a + di, b + dj
                    sl = x[:, :, r0:r0 + 2 * Hp - 1:2, c0:c0 + 2 * Wp - 1:2]
                    cols.append(sl)                           # (N, C, Hp, Wp)
            blk = jnp.stack(cols, axis=2)                     # (N, C, k*k, Hp, Wp)
            blk = blk.reshape(G, bb, K, pooled)
            blk = blk.transpose(0, 2, 3, 1)                   # (G, K, pooled, bb)
            offset_blocks.append(blk.reshape(G, K, pooled * bb))
    patches = jnp.concatenate(offset_blocks, axis=-1)         # (G, K, 4*pooled*bb)
    parts = [patches, jnp.ones((G, 1, 4 * pooled * bb), patches.dtype)]
    if kpad > K + 1:
        parts.append(jnp.zeros((G, kpad - K - 1, 4 * pooled * bb), patches.dtype))
    patches = jnp.concatenate(parts, axis=1)                  # (G, kpad, L)
    return patches.reshape(G * kpad, 4 * pooled * bb), pooled


def init_params(key):
    def uniform(key, shape, fan_in):
        bound = 1.0 / np.sqrt(fan_in)
        return jax.random.uniform(key, shape, jnp.float32, -bound, bound)

    ks = jax.random.split(key, 8)
    w1 = uniform(ks[0], (10, 1, 5, 5), 25)
    b1 = uniform(ks[1], (10,), 25)
    w2 = uniform(ks[2], (20, 10, 5, 5), 250)
    b2 = uniform(ks[3], (20,), 250)
    fw1 = uniform(ks[4], (50, 320), 320)
    fb1 = uniform(ks[5], (50,), 320)
    fw2 = uniform(ks[6], (10, 50), 50)
    fb2 = uniform(ks[7], (10,), 50)

    raw = dict(w1=w1, b1=b1, w2=w2, b2=b2, fw1=fw1, fb1=fb1, fw2=fw2, fb2=fb2)

    def conv_w_prep(w, b, kpad):
        c_out = w.shape[0]
        k_real = w.shape[1] * w.shape[2] * w.shape[3]
        out = jnp.zeros((c_out, kpad), jnp.float32)
        out = out.at[:, :k_real].set(w.reshape(c_out, k_real))
        out = out.at[:, k_real].set(b)            # bias folded into padded K row
        return out.astype(jnp.bfloat16)

    prep = {
        "w1": conv_w_prep(w1, b1, K1_PAD),                     # (10, 32)  bf16
        "w2": conv_w_prep(w2, b2, K2_PAD),                     # (20, 256) bf16
        "fw1p": fw1.reshape(50, 20, 16).transpose(2, 0, 1),    # (16, 50, 20) f32
        "fb1": fb1.reshape(50, 1),
        "fw2": fw2,                                            # (10, 50)
        "fb2": fb2.reshape(10, 1),
    }
    return raw, prep


def net_forward(x, prep):
    # x: (N, 1, 28, 28) f32 -> (N, 10) log-probs (inference semantics)
    n = x.shape[0]
    bb = min(128, ((n + 7) // 8) * 8)          # images per grid step (static)
    n_pad = ((n + bb - 1) // bb) * bb
    if n_pad != n:
        x = jnp.pad(x, ((0, n_pad - n), (0, 0), (0, 0), (0, 0)))
    G = n_pad // bb

    # conv1 (1->10, k5) + bias + maxpool2 + ReLU — one fused Pallas kernel.
    p1, pool1 = build_pool_patches_folded(x.astype(jnp.bfloat16), 5, K1_PAD, bb)
    h1_2d = conv_pool_relu(p1, prep["w1"], c_out=10, pooled=pool1, bb=bb, G=G)
    # (10, G*144*bb) bf16 -> NCHW for the conv2 im2col (tiny bf16 tensor).
    h1 = (h1_2d.reshape(10, G, 12, 12, bb)
                .transpose(1, 4, 0, 2, 3)
                .reshape(n_pad, 10, 12, 12))

    # conv2 (10->20, k5) + pool + ReLU + fc1 + ReLU + fc2 + log_softmax — fused.
    p2, pool2 = build_pool_patches_folded(h1, 5, K2_PAD, bb)
    out_t = conv2_fc(p2, prep["w2"], prep["fw1p"], prep["fb1"],
                     prep["fw2"], prep["fb2"], pooled=pool2, bb=bb, G=G)
    return out_t.T[:n]


def reference_forward(x, raw):
    # Pure-JAX (XLA) reference used only to validate the Pallas pipeline.
    def conv(v, w, b):
        y = lax.conv_general_dilated(v, w, (1, 1), "VALID",
                                     dimension_numbers=("NCHW", "OIHW", "NCHW"))
        return y + b.reshape(1, -1, 1, 1)

    def pool_relu(v):
        y = lax.reduce_window(v, -jnp.inf, lax.max, (1, 1, 2, 2), (1, 1, 2, 2), "VALID")
        return jnp.maximum(y, 0.0)

    h = pool_relu(conv(x, raw["w1"], raw["b1"]))
    h = pool_relu(conv(h, raw["w2"], raw["b2"]))
    h = h.reshape(h.shape[0], 320)
    h = jnp.maximum(h @ raw["fw1"].T + raw["fb1"], 0.0)
    logits = h @ raw["fw2"].T + raw["fb2"]
    return jax.nn.log_softmax(logits, axis=-1)


if __name__ == "__main__":
    key = jax.random.PRNGKey(0)
    k_x, k_p = jax.random.split(key)
    # MNIST-style input: batch=2, 1 channel, 28x28 (required so flatten -> 320)
    x = jax.random.normal(k_x, (2, 1, 28, 28), dtype=jnp.float32)
    raw, prep = init_params(k_p)

    out = jax.jit(net_forward)(x, prep)
    jax.block_until_ready(out)
    assert out.shape == (2, 10)
    # log_softmax rows should (approximately) exponentiate-and-sum to 1
    assert np.allclose(np.exp(np.asarray(out)).sum(axis=-1), 1.0, atol=1e-4)

    # Validate the fused Pallas pipeline against a plain-XLA reference
    # (bf16 conv matmuls / bf16-folded biases with f32 accumulation -> loose tol).
    ref = reference_forward(x, raw)
    assert np.allclose(np.asarray(out), np.asarray(ref), atol=2e-2, rtol=2e-2)
    print("KERNEL_OK")
</pallas_src>

<mosaic_0001>
module attributes {stable_mosaic.version = 11 : i64} {
  func.func @conv_pool_relu_kernel(%arg0: i32, %arg1: memref<32x4608xbf16, #tpu.memory_space<vmem>>, %arg2: memref<10x32xbf16, #tpu.memory_space<vmem>>, %arg3: memref<10x1152xbf16, #tpu.memory_space<vmem>>) attributes {dimension_semantics = [#tpu.dimension_semantics<parallel>], iteration_bounds = array<i64: 1>, scalar_prefetch = 0 : i64, scratch_operands = 0 : i64, tpu.core_type = #tpu.core_type<tc>, window_params = [{transform_indices = @transform_0, window_bounds = array<i64: 32, 4608>}, {pipeline_mode = #tpu.pipeline_mode<synchronous>, transform_indices = @transform_1, window_bounds = array<i64: 10, 32>}, {transform_indices = @transform_2, window_bounds = array<i64: 10, 1152>}]} {
    %c0 = arith.constant 0 : index
    %c0_0 = arith.constant 0 : index
    %0 = vector.load %arg2[%c0, %c0_0] : memref<10x32xbf16, #tpu.memory_space<vmem>>, vector<10x32xbf16>
    %c0_1 = arith.constant 0 : index
    %c0_2 = arith.constant 0 : index
    %1 = vector.load %arg1[%c0_1, %c0_2] : memref<32x4608xbf16, #tpu.memory_space<vmem>>, vector<32x1152xbf16>
    %cst = arith.constant dense<0.000000e+00> : vector<10x1152xf32>
    %2 = tpu.matmul %0, %1, %cst {dimension_numbers = #tpu.dot_dimension_numbers<[1], [0], [0], [1], [0, 0, 1, 1], [], []>} : vector<10x32xbf16>, vector<32x1152xbf16>, vector<10x1152xf32> -> vector<10x1152xf32>
    %c0_3 = arith.constant 0 : index
    %c1152 = arith.constant 1152 : index
    %3 = vector.load %arg1[%c0_3, %c1152] : memref<32x4608xbf16, #tpu.memory_space<vmem>>, vector<32x1152xbf16>
    %cst_4 = arith.constant dense<0.000000e+00> : vector<10x1152xf32>
    %4 = tpu.matmul %0, %3, %cst_4 {dimension_numbers = #tpu.dot_dimension_numbers<[1], [0], [0], [1], [0, 0, 1, 1], [], []>} : vector<10x32xbf16>, vector<32x1152xbf16>, vector<10x1152xf32> -> vector<10x1152xf32>
    %5 = arith.maximumf %2, %4 : vector<10x1152xf32>
    %c0_5 = arith.constant 0 : index
    %c2304 = arith.constant 2304 : index
    %6 = vector.load %arg1[%c0_5, %c2304] : memref<32x4608xbf16, #tpu.memory_space<vmem>>, vector<32x1152xbf16>
    %cst_6 = arith.constant dense<0.000000e+00> : vector<10x1152xf32>
    %7 = tpu.matmul %0, %6, %cst_6 {dimension_numbers = #tpu.dot_dimension_numbers<[1], [0], [0], [1], [0, 0, 1, 1], [], []>} : vector<10x32xbf16>, vector<32x1152xbf16>, vector<10x1152xf32> -> vector<10x1152xf32>
    %8 = arith.maximumf %5, %7 : vector<10x1152xf32>
    %c0_7 = arith.constant 0 : index
    %c3456 = arith.constant 3456 : index
    %9 = vector.load %arg1[%c0_7, %c3456] : memref<32x4608xbf16, #tpu.memory_space<vmem>>, vector<32x1152xbf16>
    %cst_8 = arith.constant dense<0.000000e+00> : vector<10x1152xf32>
    %10 = tpu.matmul %0, %9, %cst_8 {dimension_numbers = #tpu.dot_dimension_numbers<[1], [0], [0], [1], [0, 0, 1, 1], [], []>} : vector<10x32xbf16>, vector<32x1152xbf16>, vector<10x1152xf32> -> vector<10x1152xf32>
    %11 = arith.maximumf %8, %10 : vector<10x1152xf32>
    %cst_9 = arith.constant 0.000000e+00 : f32
    %12 = vector.broadcast %cst_9 : f32 to vector<10x1152xf32>
    %13 = arith.maximumf %11, %12 : vector<10x1152xf32>
    %14 = arith.truncf %13 : vector<10x1152xf32> to vector<10x1152xbf16>
    %c0_10 = arith.constant 0 : index
    %c0_11 = arith.constant 0 : index
    %15 = vector.load %arg3[%c0_10, %c0_11] : memref<10x1152xbf16, #tpu.memory_space<vmem>>, vector<10x1152xbf16>
    tpu.vector_store %arg3[%c0_10, %c0_11], %14 {strides = array<i32>} : memref<10x1152xbf16, #tpu.memory_space<vmem>>, vector<10x1152xbf16>,
    return
  }
  func.func @transform_0(%arg0: i32) -> (i32, i32) {
    %c0_i32 = arith.constant 0 : i32
    %c0_i32_0 = arith.constant 0 : i32
    return %arg0, %c0_i32 : i32, i32
  }
  func.func @transform_1(%arg0: i32) -> (i32, i32) {
    %c0_i32 = arith.constant 0 : i32
    %c0_i32_0 = arith.constant 0 : i32
    %c0_i32_1 = arith.constant 0 : i32
    return %c0_i32, %c0_i32_0 : i32, i32
  }
  func.func @transform_2(%arg0: i32) -> (i32, i32) {
    %c0_i32 = arith.constant 0 : i32
    %c0_i32_0 = arith.constant 0 : i32
    return %c0_i32, %arg0 : i32, i32
  }
}

module attributes {stable_mosaic.version = 11 : i64} {
  func.func @conv2_fc_kernel(%arg0: i32, %arg1: memref<256x512xbf16, #tpu.memory_space<vmem>>, %arg2: memref<20x256xbf16, #tpu.memory_space<vmem>>, %arg3: memref<16x50x20xf32, #tpu.memory_space<vmem>>, %arg4: memref<50x1xf32, #tpu.memory_space<vmem>>, %arg5: memref<10x50xf32, #tpu.memory_space<vmem>>, %arg6: memref<10x1xf32, #tpu.memory_space<vmem>>, %arg7: memref<10x8xf32, #tpu.memory_space<vmem>>) attributes {dimension_semantics = [#tpu.dimension_semantics<parallel>], iteration_bounds = array<i64: 1>, scalar_prefetch = 0 : i64, scratch_operands = 0 : i64, tpu.core_type = #tpu.core_type<tc>, window_params = [{transform_indices = @transform_0, window_bounds = array<i64: 256, 512>}, {pipeline_mode = #tpu.pipeline_mode<synchronous>, transform_indices = @transform_1, window_bounds = array<i64: 20, 256>}, {pipeline_mode = #tpu.pipeline_mode<synchronous>, transform_indices = @transform_2, window_bounds = array<i64: 16, 50, 20>}, {pipeline_mode = #tpu.pipeline_mode<synchronous>, transform_indices = @transform_3, window_bounds = array<i64: 50, 1>}, {pipeline_mode = #tpu.pipeline_mode<synchronous>, transform_indices = @transform_4, window_bounds = array<i64: 10, 50>}, {pipeline_mode = #tpu.pipeline_mode<synchronous>, transform_indices = @transform_5, window_bounds = array<i64: 10, 1>}, {transform_indices = @transform_6, window_bounds = array<i64: 10, 8>}]} {
    %c0 = arith.constant 0 : index
    %c0_0 = arith.constant 0 : index
    %0 = vector.load %arg2[%c0, %c0_0] : memref<20x256xbf16, #tpu.memory_space<vmem>>, vector<20x256xbf16>
    %c0_1 = arith.constant 0 : index
    %c0_2 = arith.constant 0 : index
    %1 = vector.load %arg1[%c0_1, %c0_2] : memref<256x512xbf16, #tpu.memory_space<vmem>>, vector<256x128xbf16>
    %cst = arith.constant dense<0.000000e+00> : vector<20x128xf32>
    %2 = tpu.matmul %0, %1, %cst {dimension_numbers = #tpu.dot_dimension_numbers<[1], [0], [0], [1], [0, 0, 1, 1], [], []>} : vector<20x256xbf16>, vector<256x128xbf16>, vector<20x128xf32> -> vector<20x128xf32>
    %c0_3 = arith.constant 0 : index
    %c128 = arith.constant 128 : index
    %3 = vector.load %arg1[%c0_3, %c128] : memref<256x512xbf16, #tpu.memory_space<vmem>>, vector<256x128xbf16>
    %cst_4 = arith.constant dense<0.000000e+00> : vector<20x128xf32>
    %4 = tpu.matmul %0, %3, %cst_4 {dimension_numbers = #tpu.dot_dimension_numbers<[1], [0], [0], [1], [0, 0, 1, 1], [], []>} : vector<20x256xbf16>, vector<256x128xbf16>, vector<20x128xf32> -> vector<20x128xf32>
    %5 = arith.maximumf %2, %4 : vector<20x128xf32>
    %c0_5 = arith.constant 0 : index
    %c256 = arith.constant 256 : index
    %6 = vector.load %arg1[%c0_5, %c256] : memref<256x512xbf16, #tpu.memory_space<vmem>>, vector<256x128xbf16>
    %cst_6 = arith.constant dense<0.000000e+00> : vector<20x128xf32>
    %7 = tpu.matmul %0, %6, %cst_6 {dimension_numbers = #tpu.dot_dimension_numbers<[1], [0], [0], [1], [0, 0, 1, 1], [], []>} : vector<20x256xbf16>, vector<256x128xbf16>, vector<20x128xf32> -> vector<20x128xf32>
    %8 = arith.maximumf %5, %7 : vector<20x128xf32>
    %c0_7 = arith.constant 0 : index
    %c384 = arith.constant 384 : index
    %9 = vector.load %arg1[%c0_7, %c384] : memref<256x512xbf16, #tpu.memory_space<vmem>>, vector<256x128xbf16>
    %cst_8 = arith.constant dense<0.000000e+00> : vector<20x128xf32>
    %10 = tpu.matmul %0, %9, %cst_8 {dimension_numbers = #tpu.dot_dimension_numbers<[1], [0], [0], [1], [0, 0, 1, 1], [], []>} : vector<20x256xbf16>, vector<256x128xbf16>, vector<20x128xf32> -> vector<20x128xf32>
    %11 = arith.maximumf %8, %10 : vector<20x128xf32>
    %cst_9 = arith.constant 0.000000e+00 : f32
    %12 = vector.broadcast %cst_9 : f32 to vector<20x128xf32>
    %13 = arith.maximumf %11, %12 : vector<20x128xf32>
    %c0_10 = arith.constant 0 : index
    %c0_11 = arith.constant 0 : index
    %c0_12 = arith.constant 0 : index
    %14 = vector.load %arg3[%c0_10, %c0_11, %c0_12] : memref<16x50x20xf32, #tpu.memory_space<vmem>>, vector<1x50x20xf32>
    %15 = vector.shape_cast %14 : vector<1x50x20xf32> to vector<50x20xf32>
    %16 = vector.extract_strided_slice %13 {offsets = [0, 0], sizes = [20, 8], strides = [1, 1]} : vector<20x128xf32> to vector<20x8xf32>
    %cst_13 = arith.constant dense<0.000000e+00> : vector<50x8xf32>
    %17 = tpu.matmul %15, %16, %cst_13 {dimension_numbers = #tpu.dot_dimension_numbers<[1], [0], [0], [1], [0, 0, 1, 1], [], []>} : vector<50x20xf32>, vector<20x8xf32>, vector<50x8xf32> -> vector<50x8xf32>
    %c1 = arith.constant 1 : index
    %c0_14 = arith.constant 0 : index
    %c0_15 = arith.constant 0 : index
    %18 = vector.load %arg3[%c1, %c0_14, %c0_15] : memref<16x50x20xf32, #tpu.memory_space<vmem>>, vector<1x50x20xf32>
    %19 = vector.shape_cast %18 : vector<1x50x20xf32> to vector<50x20xf32>
    %20 = vector.extract_strided_slice %13 {offsets = [0, 8], sizes = [20, 8], strides = [1, 1]} : vector<20x128xf32> to vector<20x8xf32>
    %cst_16 = arith.constant dense<0.000000e+00> : vector<50x8xf32>
    %21 = tpu.matmul %19, %20, %cst_16 {dimension_numbers = #tpu.dot_dimension_numbers<[1], [0], [0], [1], [0, 0, 1, 1], [], []>} : vector<50x20xf32>, vector<20x8xf32>, vector<50x8xf32> -> vector<50x8xf32>
    %22 = arith.addf %17, %21 : vector<50x8xf32>
    %c2 = arith.constant 2 : index
    %c0_17 = arith.constant 0 : index
    %c0_18 = arith.constant 0 : index
    %23 = vector.load %arg3[%c2, %c0_17, %c0_18] : memref<16x50x20xf32, #tpu.memory_space<vmem>>, vector<1x50x20xf32>
    %24 = vector.shape_cast %23 : vector<1x50x20xf32> to vector<50x20xf32>
    %25 = vector.extract_strided_slice %13 {offsets = [0, 16], sizes = [20, 8], strides = [1, 1]} : vector<20x128xf32> to vector<20x8xf32>
    %cst_19 = arith.constant dense<0.000000e+00> : vector<50x8xf32>
    %26 = tpu.matmul %24, %25, %cst_19 {dimension_numbers = #tpu.dot_dimension_numbers<[1], [0], [0], [1], [0, 0, 1, 1], [], []>} : vector<50x20xf32>, vector<20x8xf32>, vector<50x8xf32> -> vector<50x8xf32>
    %27 = arith.addf %22, %26 : vector<50x8xf32>
    %c3 = arith.constant 3 : index
    %c0_20 = arith.constant 0 : index
    %c0_21 = arith.constant 0 : index
    %28 = vector.load %arg3[%c3, %c0_20, %c0_21] : memref<16x50x20xf32, #tpu.memory_space<vmem>>, vector<1x50x20xf32>
    %29 = vector.shape_cast %28 : vector<1x50x20xf32> to vector<50x20xf32>
    %30 = vector.extract_strided_slice %13 {offsets = [0, 24], sizes = [20, 8], strides = [1, 1]} : vector<20x128xf32> to vector<20x8xf32>
    %cst_22 = arith.constant dense<0.000000e+00> : vector<50x8xf32>
    %31 = tpu.matmul %29, %30, %cst_22 {dimension_numbers = #tpu.dot_dimension_numbers<[1], [0], [0], [1], [0, 0, 1, 1], [], []>} : vector<50x20xf32>, vector<20x8xf32>, vector<50x8xf32> -> vector<50x8xf32>
    %32 = arith.addf %27, %31 : vector<50x8xf32>
    %c4 = arith.constant 4 : index
    %c0_23 = arith.constant 0 : index
    %c0_24 = arith.constant 0 : index
    %33 = vector.load %arg3[%c4, %c0_23, %c0_24] : memref<16x50x20xf32, #tpu.memory_space<vmem>>, vector<1x50x20xf32>
    %34 = vector.shape_cast %33 : vector<1x50x20xf32> to vector<50x20xf32>
    %35 = vector.extract_strided_slice %13 {offsets = [0, 32], sizes = [20, 8], strides = [1, 1]} : vector<20x128xf32> to vector<20x8xf32>
    %cst_25 = arith.constant dense<0.000000e+00> : vector<50x8xf32>
    %36 = tpu.matmul %34, %35, %cst_25 {dimension_numbers = #tpu.dot_dimension_numbers<[1], [0], [0], [1], [0, 0, 1, 1], [], []>} : vector<50x20xf32>, vector<20x8xf32>, vector<50x8xf32> -> vector<50x8xf32>
    %37 = arith.addf %32, %36 : vector<50x8xf32>
    %c5 = arith.constant 5 : index
    %c0_26 = arith.constant 0 : index
    %c0_27 = arith.constant 0 : index
    %38 = vector.load %arg3[%c5, %c0_26, %c0_27] : memref<16x50x20xf32, #tpu.memory_space<vmem>>, vector<1x50x20xf32>
    %39 = vector.shape_cast %38 : vector<1x50x20xf32> to vector<50x20xf32>
    %40 = vector.extract_strided_slice %13 {offsets = [0, 40], sizes = [20, 8], strides = [1, 1]} : vector<20x128xf32> to vector<20x8xf32>
    %cst_28 = arith.constant dense<0.000000e+00> : vector<50x8xf32>
    %41 = tpu.matmul %39, %40, %cst_28 {dimension_numbers = #tpu.dot_dimension_numbers<[1], [0], [0], [1], [0, 0, 1, 1], [], []>} : vector<50x20xf32>, vector<20x8xf32>, vector<50x8xf32> -> vector<50x8xf32>
    %42 = arith.addf %37, %41 : vector<50x8xf32>
    %c6 = arith.constant 6 : index
    %c0_29 = arith.constant 0 : index
    %c0_30 = arith.constant 0 : index
    %43 = vector.load %arg3[%c6, %c0_29, %c0_30] : memref<16x50x20xf32, #tpu.memory_space<vmem>>, vector<1x50x20xf32>
    %44 = vector.shape_cast %43 : vector<1x50x20xf32> to vector<50x20xf32>
    %45 = vector.extract_strided_slice %13 {offsets = [0, 48], sizes = [20, 8], strides = [1, 1]} : vector<20x128xf32> to vector<20x8xf32>
    %cst_31 = arith.constant dense<0.000000e+00> : vector<50x8xf32>
    %46 = tpu.matmul %44, %45, %cst_31 {dimension_numbers = #tpu.dot_dimension_numbers<[1], [0], [0], [1], [0, 0, 1, 1], [], []>} : vector<50x20xf32>, vector<20x8xf32>, vector<50x8xf32> -> vector<50x8xf32>
    %47 = arith.addf %42, %46 : vector<50x8xf32>
    %c7 = arith.constant 7 : index
    %c0_32 = arith.constant 0 : index
    %c0_33 = arith.constant 0 : index
    %48 = vector.load %arg3[%c7, %c0_32, %c0_33] : memref<16x50x20xf32, #tpu.memory_space<vmem>>, vector<1x50x20xf32>
    %49 = vector.shape_cast %48 : vector<1x50x20xf32> to vector<50x20xf32>
    %50 = vector.extract_strided_slice %13 {offsets = [0, 56], sizes = [20, 8], strides = [1, 1]} : vector<20x128xf32> to vector<20x8xf32>
    %cst_34 = arith.constant dense<0.000000e+00> : vector<50x8xf32>
    %51 = tpu.matmul %49, %50, %cst_34 {dimension_numbers = #tpu.dot_dimension_numbers<[1], [0], [0], [1], [0, 0, 1, 1], [], []>} : vector<50x20xf32>, vector<20x8xf32>, vector<50x8xf32> -> vector<50x8xf32>
    %52 = arith.addf %47, %51 : vector<50x8xf32>
    %c8 = arith.constant 8 : index
    %c0_35 = arith.constant 0 : index
    %c0_36 = arith.constant 0 : index
    %53 = vector.load %arg3[%c8, %c0_35, %c0_36] : memref<16x50x20xf32, #tpu.memory_space<vmem>>, vector<1x50x20xf32>
    %54 = vector.shape_cast %53 : vector<1x50x20xf32> to vector<50x20xf32>
    %55 = vector.extract_strided_slice %13 {offsets = [0, 64], sizes = [20, 8], strides = [1, 1]} : vector<20x128xf32> to vector<20x8xf32>
    %cst_37 = arith.constant dense<0.000000e+00> : vector<50x8xf32>
    %56 = tpu.matmul %54, %55, %cst_37 {dimension_numbers = #tpu.dot_dimension_numbers<[1], [0], [0], [1], [0, 0, 1, 1], [], []>} : vector<50x20xf32>, vector<20x8xf32>, vector<50x8xf32> -> vector<50x8xf32>
    %57 = arith.addf %52, %56 : vector<50x8xf32>
    %c9 = arith.constant 9 : index
    %c0_38 = arith.constant 0 : index
    %c0_39 = arith.constant 0 : index
    %58 = vector.load %arg3[%c9, %c0_38, %c0_39] : memref<16x50x20xf32, #tpu.memory_space<vmem>>, vector<1x50x20xf32>
    %59 = vector.shape_cast %58 : vector<1x50x20xf32> to vector<50x20xf32>
    %60 = vector.extract_strided_slice %13 {offsets = [0, 72], sizes = [20, 8], strides = [1, 1]} : vector<20x128xf32> to vector<20x8xf32>
    %cst_40 = arith.constant dense<0.000000e+00> : vector<50x8xf32>
    %61 = tpu.matmul %59, %60, %cst_40 {dimension_numbers = #tpu.dot_dimension_numbers<[1], [0], [0], [1], [0, 0, 1, 1], [], []>} : vector<50x20xf32>, vector<20x8xf32>, vector<50x8xf32> -> vector<50x8xf32>
    %62 = arith.addf %57, %61 : vector<50x8xf32>
    %c10 = arith.constant 10 : index
    %c0_41 = arith.constant 0 : index
    %c0_42 = arith.constant 0 : index
    %63 = vector.load %arg3[%c10, %c0_41, %c0_42] : memref<16x50x20xf32, #tpu.memory_space<vmem>>, vector<1x50x20xf32>
    %64 = vector.shape_cast %63 : vector<1x50x20xf32> to vector<50x20xf32>
    %65 = vector.extract_strided_slice %13 {offsets = [0, 80], sizes = [20, 8], strides = [1, 1]} : vector<20x128xf32> to vector<20x8xf32>
    %cst_43 = arith.constant dense<0.000000e+00> : vector<50x8xf32>
    %66 = tpu.matmul %64, %65, %cst_43 {dimension_numbers = #tpu.dot_dimension_numbers<[1], [0], [0], [1], [0, 0, 1, 1], [], []>} : vector<50x20xf32>, vector<20x8xf32>, vector<50x8xf32> -> vector<50x8xf32>
    %67 = arith.addf %62, %66 : vector<50x8xf32>
    %c11 = arith.constant 11 : index
    %c0_44 = arith.constant 0 : index
    %c0_45 = arith.constant 0 : index
    %68 = vector.load %arg3[%c11, %c0_44, %c0_45] : memref<16x50x20xf32, #tpu.memory_space<vmem>>, vector<1x50x20xf32>
    %69 = vector.shape_cast %68 : vector<1x50x20xf32> to vector<50x20xf32>
    %70 = vector.extract_strided_slice %13 {offsets = [0, 88], sizes = [20, 8], strides = [1, 1]} : vector<20x128xf32> to vector<20x8xf32>
    %cst_46 = arith.constant dense<0.000000e+00> : vector<50x8xf32>
    %71 = tpu.matmul %69, %70, %cst_46 {dimension_numbers = #tpu.dot_dimension_numbers<[1], [0], [0], [1], [0, 0, 1, 1], [], []>} : vector<50x20xf32>, vector<20x8xf32>, vector<50x8xf32> -> vector<50x8xf32>
    %72 = arith.addf %67, %71 : vector<50x8xf32>
    %c12 = arith.constant 12 : index
    %c0_47 = arith.constant 0 : index
    %c0_48 = arith.constant 0 : index
    %73 = vector.load %arg3[%c12, %c0_47, %c0_48] : memref<16x50x20xf32, #tpu.memory_space<vmem>>, vector<1x50x20xf32>
    %74 = vector.shape_cast %73 : vector<1x50x20xf32> to vector<50x20xf32>
    %75 = vector.extract_strided_slice %13 {offsets = [0, 96], sizes = [20, 8], strides = [1, 1]} : vector<20x128xf32> to vector<20x8xf32>
    %cst_49 = arith.constant dense<0.000000e+00> : vector<50x8xf32>
    %76 = tpu.matmul %74, %75, %cst_49 {dimension_numbers = #tpu.dot_dimension_numbers<[1], [0], [0], [1], [0, 0, 1, 1], [], []>} : vector<50x20xf32>, vector<20x8xf32>, vector<50x8xf32> -> vector<50x8xf32>
    %77 = arith.addf %72, %76 : vector<50x8xf32>
    %c13 = arith.constant 13 : index
    %c0_50 = arith.constant 0 : index
    %c0_51 = arith.constant 0 : index
    %78 = vector.load %arg3[%c13, %c0_50, %c0_51] : memref<16x50x20xf32, #tpu.memory_space<vmem>>, vector<1x50x20xf32>
    %79 = vector.shape_cast %78 : vector<1x50x20xf32> to vector<50x20xf32>
    %80 = vector.extract_strided_slice %13 {offsets = [0, 104], sizes = [20, 8], strides = [1, 1]} : vector<20x128xf32> to vector<20x8xf32>
    %cst_52 = arith.constant dense<0.000000e+00> : vector<50x8xf32>
    %81 = tpu.matmul %79, %80, %cst_52 {dimension_numbers = #tpu.dot_dimension_numbers<[1], [0], [0], [1], [0, 0, 1, 1], [], []>} : vector<50x20xf32>, vector<20x8xf32>, vector<50x8xf32> -> vector<50x8xf32>
    %82 = arith.addf %77, %81 : vector<50x8xf32>
    %c14 = arith.constant 14 : index
    %c0_53 = arith.constant 0 : index
    %c0_54 = arith.constant 0 : index
    %83 = vector.load %arg3[%c14, %c0_53, %c0_54] : memref<16x50x20xf32, #tpu.memory_space<vmem>>, vector<1x50x20xf32>
    %84 = vector.shape_cast %83 : vector<1x50x20xf32> to vector<50x20xf32>
    %85 = vector.extract_strided_slice %13 {offsets = [0, 112], sizes = [20, 8], strides = [1, 1]} : vector<20x128xf32> to vector<20x8xf32>
    %cst_55 = arith.constant dense<0.000000e+00> : vector<50x8xf32>
    %86 = tpu.matmul %84, %85, %cst_55 {dimension_numbers = #tpu.dot_dimension_numbers<[1], [0], [0], [1], [0, 0, 1, 1], [], []>} : vector<50x20xf32>, vector<20x8xf32>, vector<50x8xf32> -> vector<50x8xf32>
    %87 = arith.addf %82, %86 : vector<50x8xf32>
    %c15 = arith.constant 15 : index
    %c0_56 = arith.constant 0 : index
    %c0_57 = arith.constant 0 : index
    %88 = vector.load %arg3[%c15, %c0_56, %c0_57] : memref<16x50x20xf32, #tpu.memory_space<vmem>>, vector<1x50x20xf32>
    %89 = vector.shape_cast %88 : vector<1x50x20xf32> to vector<50x20xf32>
    %90 = vector.extract_strided_slice %13 {offsets = [0, 120], sizes = [20, 8], strides = [1, 1]} : vector<20x128xf32> to vector<20x8xf32>
    %cst_58 = arith.constant dense<0.000000e+00> : vector<50x8xf32>
    %91 = tpu.matmul %89, %90, %cst_58 {dimension_numbers = #tpu.dot_dimension_numbers<[1], [0], [0], [1], [0, 0, 1, 1], [], []>} : vector<50x20xf32>, vector<20x8xf32>, vector<50x8xf32> -> vector<50x8xf32>
    %92 = arith.addf %87, %91 : vector<50x8xf32>
    %c0_59 = arith.constant 0 : index
    %c0_60 = arith.constant 0 : index
    %93 = vector.load %arg4[%c0_59, %c0_60] : memref<50x1xf32, #tpu.memory_space<vmem>>, vector<50x1xf32>
    %94 = vector.broadcast %93 : vector<50x1xf32> to vector<50x8xf32>
    %95 = arith.addf %92, %94 : vector<50x8xf32>
    %cst_61 = arith.constant 0.000000e+00 : f32
    %96 = vector.broadcast %cst_61 : f32 to vector<50x8xf32>
    %97 = arith.maximumf %95, %96 : vector<50x8xf32>
    %c0_62 = arith.constant 0 : index
    %c0_63 = arith.constant 0 : index
    %98 = vector.load %arg5[%c0_62, %c0_63] : memref<10x50xf32, #tpu.memory_space<vmem>>, vector<10x50xf32>
    %cst_64 = arith.constant dense<0.000000e+00> : vector<10x8xf32>
    %99 = tpu.matmul %98, %97, %cst_64 {dimension_numbers = #tpu.dot_dimension_numbers<[1], [0], [0], [1], [0, 0, 1, 1], [], []>} : vector<10x50xf32>, vector<50x8xf32>, vector<10x8xf32> -> vector<10x8xf32>
    %c0_65 = arith.constant 0 : index
    %c0_66 = arith.constant 0 : index
    %100 = vector.load %arg6[%c0_65, %c0_66] : memref<10x1xf32, #tpu.memory_space<vmem>>, vector<10x1xf32>
    %101 = vector.broadcast %100 : vector<10x1xf32> to vector<10x8xf32>
    %102 = arith.addf %99, %101 : vector<10x8xf32>
    %cst_67 = arith.constant dense<0xFF800000> : vector<8xf32>
    %103 = vector.multi_reduction <maximumf>, %102, %cst_67 [0] : vector<10x8xf32> to vector<8xf32>
    %104 = vector.shape_cast %103 : vector<8xf32> to vector<1x8xf32>
    %105 = vector.broadcast %104 : vector<1x8xf32> to vector<10x8xf32>
    %106 = arith.subf %102, %105 : vector<10x8xf32>
    %107 = math.exp %106 : vector<10x8xf32>
    %cst_68 = arith.constant dense<0.000000e+00> : vector<8xf32>
    %108 = vector.multi_reduction <add>, %107, %cst_68 [0] : vector<10x8xf32> to vector<8xf32>
    %109 = vector.shape_cast %108 : vector<8xf32> to vector<1x8xf32>
    %110 = math.log %109 : vector<1x8xf32>
    %111 = vector.broadcast %110 : vector<1x8xf32> to vector<10x8xf32>
    %112 = arith.subf %106, %111 : vector<10x8xf32>
    %c0_69 = arith.constant 0 : index
    %c0_70 = arith.constant 0 : index
    %113 = vector.load %arg7[%c0_69, %c0_70] : memref<10x8xf32, #tpu.memory_space<vmem>>, vector<10x8xf32>
    tpu.vector_store %arg7[%c0_69, %c0_70], %112 {strides = array<i32>} : memref<10x8xf32, #tpu.memory_space<vmem>>, vector<10x8xf32>,
    return
  }
  func.func @transform_0(%arg0: i32) -> (i32, i32) {
    %c0_i32 = arith.constant 0 : i32
    %c0_i32_0 = arith.constant 0 : i32
    return %arg0, %c0_i32 : i32, i32
  }
  func.func @transform_1(%arg0: i32) -> (i32, i32) {
    %c0_i32 = arith.constant 0 : i32
    %c0_i32_0 = arith.constant 0 : i32
    %c0_i32_1 = arith.constant 0 : i32
    return %c0_i32, %c0_i32_0 : i32, i32
  }
  func.func @transform_2(%arg0: i32) -> (i32, i32, i32) {
    %c0_i32 = arith.constant 0 : i32
    %c0_i32_0 = arith.constant 0 : i32
    %c0_i32_1 = arith.constant 0 : i32
    %c0_i32_2 = arith.constant 0 : i32
    return %c0_i32, %c0_i32_0, %c0_i32_1 : i32, i32, i32
  }
  func.func @transform_3(%arg0: i32) -> (i32, i32) {
    %c0_i32 = arith.constant 0 : i32
    %c0_i32_0 = arith.constant 0 : i32
    %c0_i32_1 = arith.constant 0 : i32
    return %c0_i32, %c0_i32_0 : i32, i32
  }
  func.func @transform_4(%arg0: i32) -> (i32, i32) {
    %c0_i32 = arith.constant 0 : i32
    %c0_i32_0 = arith.constant 0 : i32
    %c0_i32_1 = arith.constant 0 : i32
    return %c0_i32, %c0_i32_0 : i32, i32
  }
  func.func @transform_5(%arg0: i32) -> (i32, i32) {
    %c0_i32 = arith.constant 0 : i32
    %c0_i32_0 = arith.constant 0 : i32
    %c0_i32_1 = arith.constant 0 : i32
    return %c0_i32, %c0_i32_0 : i32, i32
  }
  func.func @transform_6(%arg0: i32) -> (i32, i32) {
    %c0_i32 = arith.constant 0 : i32
    %c0_i32_0 = arith.constant 0 : i32
    return %c0_i32, %arg0 : i32, i32
  }
}

</mosaic_0001>

<bundles_post_ra>
// kernel: net_forward.2
= control target key start
LH: loop header
LB: loop body
LE: loop exit
PB: predicated region body
PF: predicated region fallthrough
CT: control target
= control target key end

     0   :  { %v1730_v1 = vmov 0   ;;  %vm131_vm0 = vcmask 261120   ;;  %v1731_v21 = vmov 0.0   ;;  %vm1732_vm1 = vmmov 0   ;;  %s2179_s0 = inlined_call_operand.vmem [shape: bf16[32,4608], index: 0, kind: input, shape index: {}]   ;;  %s2180_s1 = inlined_call_operand.vmem [shape: bf16[10,32], index: 1, kind: input, shape index: {}]   ;;  %s2181_s2 = inlined_call_operand.vmem [shape: bf16[10,1152], index: 2, kind: output, shape index: {}]  }
   0x1   :  { %v1625_v0 = vld [vmem:[%s2179_s0 + $0x124] ss:$144 sps:$4 sm:$0xff]   ;;  %167 = vmatprep.mubr.bf16.mxu0 %v1730_v1  ;;  %210 = vmatprep.mubr.bf16.mxu1 %v1730_v1  ;;  %v1627_v2 = vld [vmem:[%s2179_s0 + $0x12c] ss:$144 sps:$4 sm:$0xff]   ;;  %v1629_v3 = vld [vmem:[%s2179_s0 + $0x120] ss:$144 sps:$4 sm:$0xff]  }
   0x2   :  { %147 = vmatprep.subr.bf16.mxu0 %v1625_v0  ;;  %v1630_v4 = vld [vmem:[%s2179_s0 + $0x128] ss:$144 sps:$4 sm:$0xff]   ;;  %190 = vmatprep.subr.bf16.mxu1 %v1627_v2  ;;  %v1631_v5 = vld [vmem:[%s2179_s0 + $0x4] ss:$144 sps:$4 sm:$0xff]   ;;  %v1633_v6 = vld [vmem:[%s2179_s0 + $0xc] ss:$144 sps:$4 sm:$0xff]  }
   0x3   :  { %148 = vmatpush1.bf16.msra.mxu0 %v1629_v3  ;;  %191 = vmatpush1.bf16.msra.mxu1 %v1630_v4  ;;  %v1635_v7 = vld [vmem:[%s2179_s0] ss:$144 sps:$4 sm:$0xff]   ;;  %v1636_v8 = vld [vmem:[%s2179_s0 + $0x8] ss:$144 sps:$4 sm:$0xff]   ;;  %v1640_v11 = vld [vmem:[%s2179_s0 + $0x134] ss:$144 sps:$4 sm:$0xff]  }
   0x4   :  { %149 = vmatprep.subr.bf16.mxu0 %v1631_v5  ;;  %192 = vmatprep.subr.bf16.mxu1 %v1633_v6  ;;  %v1777_v9 = vld [vmem:[%s2180_s1] sm:$0x1f]   ;;  %v1641_v12 = vld [vmem:[%s2179_s0 + $0x138] ss:$144 sps:$4 sm:$0xff]   ;;  %v1643_v13 = vld [vmem:[%s2179_s0 + $0x13c] ss:$144 sps:$4 sm:$0xff]  }
   0x5   :  { %v1638_v10 = vld [vmem:[%s2179_s0 + $0x130] ss:$144 sps:$4 sm:$0xff]   ;;  %v1646_v14 = vld [vmem:[%s2179_s0 + $0x14] ss:$144 sps:$4 sm:$0xff]   ;;  %v1649_v15 = vld [vmem:[%s2179_s0 + $0x1c] ss:$144 sps:$4 sm:$0xff]  }
   0x6   :  { %v1644_v16 = vld [vmem:[%s2179_s0 + $0x10] ss:$144 sps:$4 sm:$0xff]   ;;  %v1647_v17 = vld [vmem:[%s2179_s0 + $0x18] ss:$144 sps:$4 sm:$0xff]   ;;  %v1650_v19 = vld [vmem:[%s2179_s0 + $0x144] ss:$144 sps:$4 sm:$0xff]  }
   0x7   :  { %150 = vmatpush1.bf16.msra.mxu0 %v1635_v7  ;;  %193 = vmatpush1.bf16.msra.mxu1 %v1636_v8  ;;  %v1652_v18 = vld [vmem:[%s2179_s0 + $0x148] ss:$144 sps:$4 sm:$0xff]   ;;  %v1653_v20 = vld [vmem:[%s2179_s0 + $0x140] ss:$144 sps:$4 sm:$0xff]   ;;  %v1654_v23 = vld [vmem:[%s2179_s0 + $0x24] ss:$144 sps:$4 sm:$0xff]  }
   0x8   :  { %233 = vmatprep.subr.bf16.mxu0 %v1640_v11  ;;  %276 = vmatprep.subr.bf16.mxu1 %v1643_v13  ;;  %v1656_v22 = vld [vmem:[%s2179_s0 + $0x28] ss:$144 sps:$4 sm:$0xff]   ;;  %v1657_v24 = vld [vmem:[%s2179_s0 + $0x20] ss:$144 sps:$4 sm:$0xff]   ;;  %v1658_v27 = vld [vmem:[%s2179_s0 + $0x14c] ss:$144 sps:$4 sm:$0xff]  }
   0x9   :  { %v1660_v25 = vld [vmem:[%s2179_s0 + $0x150] ss:$144 sps:$4 sm:$0xff]   ;;  %v1663_v26 = vld [vmem:[%s2179_s0 + $0x158] ss:$144 sps:$4 sm:$0xff]   ;;  %v1661_v28 = vld [vmem:[%s2179_s0 + $0x154] ss:$144 sps:$4 sm:$0xff]  }
   0xa   :  { %1484 = vmatmul.mubr.msk.bf16.vlgmr.msra.gmra.mxu0 %vm131_vm0, %v1777_v9  ;;  %1485 = vmatmul.mubr.msk.bf16.vlgmr.msra.gmra.mxu1 %vm131_vm0, %v1777_v9  ;;  %v1666_v29 = vld [vmem:[%s2179_s0 + $0x30] ss:$144 sps:$4 sm:$0xff]   ;;  %v1669_v30 = vld [vmem:[%s2179_s0 + $0x38] ss:$144 sps:$4 sm:$0xff]   ;;  %v1664_v31 = vld [vmem:[%s2179_s0 + $0x2c] ss:$144 sps:$4 sm:$0xff]  }
   0xb   :  { %234 = vmatpush1.bf16.msra.mxu0 %v1638_v10  ;;  %277 = vmatpush1.bf16.msra.mxu1 %v1641_v12  ;;  %v1667_v32 = vld [vmem:[%s2179_s0 + $0x34] ss:$144 sps:$4 sm:$0xff]   ;;  %v1672_v33 = vld [vmem:[%s2179_s0 + $0x160] ss:$144 sps:$4 sm:$0xff]   ;;  %v1670_v34 = vld [vmem:[%s2179_s0 + $0x15c] ss:$144 sps:$4 sm:$0xff]  }
   0xc   :  { %235 = vmatprep.subr.bf16.mxu0 %v1646_v14  ;;  %278 = vmatprep.subr.bf16.mxu1 %v1649_v15  ;;  %v1673_v35 = vld [vmem:[%s2179_s0 + $0x164] ss:$144 sps:$4 sm:$0xff]   ;;  %v1676_v36 = vld [vmem:[%s2179_s0 + $0x40] ss:$144 sps:$4 sm:$0xff]   ;;  %v1674_v37 = vld [vmem:[%s2179_s0 + $0x3c] ss:$144 sps:$4 sm:$0xff]  }
   0xd   :  { %253 = vmatprep.mubr.bf16.mxu0 %v1730_v1  ;;  %296 = vmatprep.mubr.bf16.mxu1 %v1730_v1  ;;  %v1677_v38 = vld [vmem:[%s2179_s0 + $0x44] ss:$144 sps:$4 sm:$0xff]   ;;  %v1680_v39 = vld [vmem:[%s2179_s0 + $0x16c] ss:$144 sps:$4 sm:$0xff]   ;;  %v1678_v41 = vld [vmem:[%s2179_s0 + $0x168] ss:$144 sps:$4 sm:$0xff]  }
   0xe   :  { %v1683_v40 = vld [vmem:[%s2179_s0 + $0x174] ss:$144 sps:$4 sm:$0xff]   ;;  %v1681_v42 = vld [vmem:[%s2179_s0 + $0x170] ss:$144 sps:$4 sm:$0xff]   ;;  %v1686_v43 = vld [vmem:[%s2179_s0 + $0x4c] ss:$144 sps:$4 sm:$0xff]  }
   0xf   :  { %236 = vmatpush1.bf16.msra.mxu0 %v1644_v16  ;;  %279 = vmatpush1.bf16.msra.mxu1 %v1647_v17  ;;  %v1689_v44 = vld [vmem:[%s2179_s0 + $0x54] ss:$144 sps:$4 sm:$0xff]   ;;  %v1684_v45 = vld [vmem:[%s2179_s0 + $0x48] ss:$144 sps:$4 sm:$0xff]   ;;  %v1687_v46 = vld [vmem:[%s2179_s0 + $0x50] ss:$144 sps:$4 sm:$0xff]  }
  0x10   :  { %1590 = vmatprep.subr.bf16.mxu0 %v1731_v21  ;;  %472 = vmatprep.subr.bf16.mxu1 %v1652_v18  ;;  %v1692_v47 = vld [vmem:[%s2179_s0 + $0x17c] ss:$144 sps:$4 sm:$0xff]   ;;  %v1695_v48 = vld [vmem:[%s2179_s0 + $0x184] ss:$144 sps:$4 sm:$0xff]   ;;  %v1690_v49 = vld [vmem:[%s2179_s0 + $0x178] ss:$144 sps:$4 sm:$0xff]  }
  0x11   :  { %v1693_v50 = vld [vmem:[%s2179_s0 + $0x180] ss:$144 sps:$4 sm:$0xff]   ;;  %v1698_v51 = vld [vmem:[%s2179_s0 + $0x5c] ss:$144 sps:$4 sm:$0xff]   ;;  %v1701_v52 = vld [vmem:[%s2179_s0 + $0x64] ss:$144 sps:$4 sm:$0xff]  }
  0x12   :  { %1486 = vmatmul.mubr.msk.bf16.vlgmr.msra.gmra.mxu0 %vm131_vm0, %v1777_v9  ;;  %1487 = vmatmul.mubr.msk.bf16.vlgmr.msra.gmra.mxu1 %vm131_vm0, %v1777_v9  ;;  %v1696_v53 = vld [vmem:[%s2179_s0 + $0x58] ss:$144 sps:$4 sm:$0xff]   ;;  %v1699_v54 = vld [vmem:[%s2179_s0 + $0x60] ss:$144 sps:$4 sm:$0xff]   ;;  %v1702_v56 = vld [vmem:[%s2179_s0 + $0x18c] ss:$144 sps:$4 sm:$0xff]  }
  0x13   :  { %1591 = vmatpush3.bf16.msra.mxu0 %v1653_v20  ;;  %473 = vmatpush1.bf16.msra.mxu1 %v1650_v19  ;;  %v1704_v55 = vld [vmem:[%s2179_s0 + $0x190] ss:$144 sps:$4 sm:$0xff]   ;;  %v1705_v57 = vld [vmem:[%s2179_s0 + $0x188] ss:$144 sps:$4 sm:$0xff]   ;;  %v1706_v59 = vld [vmem:[%s2179_s0 + $0x6c] ss:$144 sps:$4 sm:$0xff]  }
  0x14   :  { %1592 = vmatprep.subr.bf16.mxu0 %v1731_v21  ;;  %474 = vmatprep.subr.bf16.mxu1 %v1656_v22  ;;  %v1708_v58 = vld [vmem:[%s2179_s0 + $0x70] ss:$144 sps:$4 sm:$0xff]   ;;  %v1709_v60 = vld [vmem:[%s2179_s0 + $0x68] ss:$144 sps:$4 sm:$0xff]   ;;  %v1710_v63 = vld [vmem:[%s2179_s0 + $0x194] ss:$144 sps:$4 sm:$0xff]  }
  0x15   :  { %1594 = vmatprep.mubr.msk.bf16.mxu0 %vm1732_vm1, %v1731_v21  ;;  %492 = vmatprep.mubr.bf16.mxu1 %v1730_v1  ;;  %v1712_v61 = vld [vmem:[%s2179_s0 + $0x198] ss:$144 sps:$4 sm:$0xff]   ;;  %v1715_v62 = vld [vmem:[%s2179_s0 + $0x1a0] ss:$144 sps:$4 sm:$0xff]   ;;  %v1713_v0 = vld [vmem:[%s2179_s0 + $0x19c] ss:$144 sps:$4 sm:$0xff]  }
  0x16   :  { %v1718_v2 = vld [vmem:[%s2179_s0 + $0x78] ss:$144 sps:$4 sm:$0xff]   ;;  %v1721_v3 = vld [vmem:[%s2179_s0 + $0x80] ss:$144 sps:$4 sm:$0xff]   ;;  %v1716_v4 = vld [vmem:[%s2179_s0 + $0x74] ss:$144 sps:$4 sm:$0xff]  }
  0x17   :  { %1593 = vmatpush3.bf16.msra.mxu0 %v1657_v24  ;;  %475 = vmatpush1.bf16.msra.mxu1 %v1654_v23  ;;  %v1719_v5 = vld [vmem:[%s2179_s0 + $0x7c] ss:$144 sps:$4 sm:$0xff]   ;;  %v1724_v6 = vld [vmem:[%s2179_s0 + $0x1a8] ss:$144 sps:$4 sm:$0xff]   ;;  %v1722_v7 = vld [vmem:[%s2179_s0 + $0x1a4] ss:$144 sps:$4 sm:$0xff]  }
  0x18   :  { %515 = vmatprep.subr.bf16.mxu0 %v1660_v25  ;;  %558 = vmatprep.subr.bf16.mxu1 %v1663_v26  ;;  %v1725_v8 = vld [vmem:[%s2179_s0 + $0x1ac] ss:$144 sps:$4 sm:$0xff]   ;;  %v1728_v10 = vld [vmem:[%s2179_s0 + $0x88] ss:$144 sps:$4 sm:$0xff]   ;;  %v1726_v11 = vld [vmem:[%s2179_s0 + $0x84] ss:$144 sps:$4 sm:$0xff]  }
  0x19   :  { %v1729_v12 = vld [vmem:[%s2179_s0 + $0x8c] ss:$144 sps:$4 sm:$0xff]  }
  0x1a   :  { %1595 = vmatmul.mubr.msk.bf16.vlgmr.msra.gmra.mxu0 %vm131_vm0, %v1777_v9  ;;  %1507 = vmatmul.mubr.msk.bf16.vlgmr.msra.gmra.mxu1 %vm131_vm0, %v1777_v9 }
  0x1b   :  { %516 = vmatpush1.bf16.msra.mxu0 %v1658_v27  ;;  %559 = vmatpush1.bf16.msra.mxu1 %v1661_v28 }
  0x1c   :  { %517 = vmatprep.subr.bf16.mxu0 %v1666_v29  ;;  %560 = vmatprep.subr.bf16.mxu1 %v1669_v30 }
  0x1d   :  { %535 = vmatprep.mubr.bf16.mxu0 %v1730_v1  ;;  %578 = vmatprep.mubr.bf16.mxu1 %v1730_v1 }
  0x1f   :  { %518 = vmatpush1.bf16.msra.mxu0 %v1664_v31  ;;  %561 = vmatpush1.bf16.msra.mxu1 %v1667_v32 }
  0x20   :  { %601 = vmatprep.subr.bf16.mxu0 %v1672_v33  ;;  %1598 = vmatprep.subr.bf16.mxu1 %v1731_v21 }
  0x22   :  { %1508 = vmatmul.mubr.msk.bf16.vlgmr.msra.gmra.mxu0 %vm131_vm0, %v1777_v9  ;;  %1509 = vmatmul.mubr.msk.bf16.vlgmr.msra.gmra.mxu1 %vm131_vm0, %v1777_v9 }
  0x23   :  { %602 = vmatpush1.bf16.msra.mxu0 %v1670_v34  ;;  %1599 = vmatpush3.bf16.msra.mxu1 %v1673_v35 }
  0x24   :  { %603 = vmatprep.subr.bf16.mxu0 %v1676_v36  ;;  %1600 = vmatprep.subr.bf16.mxu1 %v1731_v21 }
  0x25   :  { %621 = vmatprep.mubr.bf16.mxu0 %v1730_v1  ;;  %1602 = vmatprep.mubr.msk.bf16.mxu1 %vm1732_vm1, %v1731_v21 }
  0x27   :  { %604 = vmatpush1.bf16.msra.mxu0 %v1674_v37  ;;  %1601 = vmatpush3.bf16.msra.mxu1 %v1677_v38 }
  0x28   :  { %815 = vmatprep.subr.bf16.mxu0 %v1680_v39  ;;  %858 = vmatprep.subr.bf16.mxu1 %v1683_v40 }
  0x2a   :  { %1510 = vmatmul.mubr.msk.bf16.vlgmr.msra.gmra.mxu0 %vm131_vm0, %v1777_v9  ;;  %1603 = vmatmul.mubr.msk.bf16.vlgmr.msra.gmra.mxu1 %vm131_vm0, %v1777_v9 }
  0x2b   :  { %816 = vmatpush1.bf16.msra.mxu0 %v1678_v41  ;;  %859 = vmatpush1.bf16.msra.mxu1 %v1681_v42 }
  0x2c   :  { %817 = vmatprep.subr.bf16.mxu0 %v1686_v43  ;;  %860 = vmatprep.subr.bf16.mxu1 %v1689_v44 }
  0x2d   :  { %835 = vmatprep.mubr.bf16.mxu0 %v1730_v1  ;;  %878 = vmatprep.mubr.bf16.mxu1 %v1730_v1 }
  0x2f   :  { %818 = vmatpush1.bf16.msra.mxu0 %v1684_v45  ;;  %861 = vmatpush1.bf16.msra.mxu1 %v1687_v46 }
  0x30   :  { %901 = vmatprep.subr.bf16.mxu0 %v1692_v47  ;;  %944 = vmatprep.subr.bf16.mxu1 %v1695_v48 }
  0x32   :  { %1530 = vmatmul.mubr.msk.bf16.vlgmr.msra.gmra.mxu0 %vm131_vm0, %v1777_v9  ;;  %1531 = vmatmul.mubr.msk.bf16.vlgmr.msra.gmra.mxu1 %vm131_vm0, %v1777_v9 }
  0x33   :  { %902 = vmatpush1.bf16.msra.mxu0 %v1690_v49  ;;  %945 = vmatpush1.bf16.msra.mxu1 %v1693_v50 }
  0x34   :  { %903 = vmatprep.subr.bf16.mxu0 %v1698_v51  ;;  %946 = vmatprep.subr.bf16.mxu1 %v1701_v52 }
  0x35   :  { %921 = vmatprep.mubr.bf16.mxu0 %v1730_v1  ;;  %964 = vmatprep.mubr.bf16.mxu1 %v1730_v1 }
  0x37   :  { %904 = vmatpush1.bf16.msra.mxu0 %v1696_v53  ;;  %947 = vmatpush1.bf16.msra.mxu1 %v1699_v54 }
  0x38   :  { %1606 = vmatprep.subr.bf16.mxu0 %v1731_v21  ;;  %1158 = vmatprep.subr.bf16.mxu1 %v1704_v55 }
  0x3a   :  { %1532 = vmatmul.mubr.msk.bf16.vlgmr.msra.gmra.mxu0 %vm131_vm0, %v1777_v9  ;;  %1533 = vmatmul.mubr.msk.bf16.vlgmr.msra.gmra.mxu1 %vm131_vm0, %v1777_v9 }
  0x3b   :  { %1607 = vmatpush3.bf16.msra.mxu0 %v1705_v57  ;;  %1159 = vmatpush1.bf16.msra.mxu1 %v1702_v56 }
  0x3c   :  { %1608 = vmatprep.subr.bf16.mxu0 %v1731_v21  ;;  %1160 = vmatprep.subr.bf16.mxu1 %v1708_v58 }
  0x3d   :  { %1610 = vmatprep.mubr.msk.bf16.mxu0 %vm1732_vm1, %v1731_v21  ;;  %1178 = vmatprep.mubr.bf16.mxu1 %v1730_v1 }
  0x3f   :  { %1609 = vmatpush3.bf16.msra.mxu0 %v1709_v60  ;;  %1161 = vmatpush1.bf16.msra.mxu1 %v1706_v59 }
  0x40   :  { %1201 = vmatprep.subr.bf16.mxu0 %v1712_v61  ;;  %1244 = vmatprep.subr.bf16.mxu1 %v1715_v62 }
  0x42   :  { %1611 = vmatmul.mubr.msk.bf16.vlgmr.msra.gmra.mxu0 %vm131_vm0, %v1777_v9  ;;  %1553 = vmatmul.mubr.msk.bf16.vlgmr.msra.gmra.mxu1 %vm131_vm0, %v1777_v9 }
  0x43   :  { %1202 = vmatpush1.bf16.msra.mxu0 %v1710_v63  ;;  %1245 = vmatpush1.bf16.msra.mxu1 %v1713_v0 }
  0x44   :  { %1203 = vmatprep.subr.bf16.mxu0 %v1718_v2  ;;  %1246 = vmatprep.subr.bf16.mxu1 %v1721_v3 }
  0x45   :  { %1221 = vmatprep.mubr.bf16.mxu0 %v1730_v1  ;;  %1264 = vmatprep.mubr.bf16.mxu1 %v1730_v1 }
  0x47   :  { %1204 = vmatpush1.bf16.msra.mxu0 %v1716_v4  ;;  %1247 = vmatpush1.bf16.msra.mxu1 %v1719_v5 }
  0x48   :  { %1287 = vmatprep.subr.bf16.mxu0 %v1724_v6  ;;  %1614 = vmatprep.subr.bf16.mxu1 %v1731_v21 }
  0x4a   :  { %1554 = vmatmul.mubr.msk.bf16.vlgmr.msra.gmra.mxu0 %vm131_vm0, %v1777_v9  ;;  %1555 = vmatmul.mubr.msk.bf16.vlgmr.msra.gmra.mxu1 %vm131_vm0, %v1777_v9 }
  0x4b   :  { %1288 = vmatpush1.bf16.msra.mxu0 %v1722_v7  ;;  %1615 = vmatpush3.bf16.msra.mxu1 %v1725_v8 }
  0x4c   :  { %1289 = vmatprep.subr.bf16.mxu0 %v1728_v10  ;;  %1616 = vmatprep.subr.bf16.mxu1 %v1731_v21 }
  0x4d   :  { %1307 = vmatprep.mubr.bf16.mxu0 %v1730_v1  ;;  %1618 = vmatprep.mubr.msk.bf16.mxu1 %vm1732_vm1, %v1731_v21 }
  0x4f   :  { %1290 = vmatpush1.bf16.msra.mxu0 %v1726_v11  ;;  %1617 = vmatpush3.bf16.msra.mxu1 %v1729_v12 }
  0x52   :  { %1556 = vmatmul.mubr.msk.bf16.vlgmr.msra.gmra.mxu0 %vm131_vm0, %v1777_v9  ;;  %1619 = vmatmul.mubr.msk.bf16.vlgmr.msra.gmra.mxu1 %vm131_vm0, %v1777_v9 }
  0xca   :  { %v169_v13 = vpop.f32.mrf.mxu0  ;;  %v2041_v14 = vpop.f32.mrf.mxu1 }
  0xcc   :  { %v171_v15 = vpop.f32.mrf.mxu0  ;;  %v2043_v16 = vpop.f32.mrf.mxu1 }
  0xce   :  { %v2045_v17 = vpop.f32.mrf.mxu0  ;;  %v2047_v1 = vpop.f32.mrf.mxu1 }
  0xd0   :  { %v2049_v18 = vpop.f32.mrf.mxu0  ;;  %v2051_v19 = vpop.f32.mrf.mxu1 }
  0xd2   :  { %v2053_v20 = vpop.f32.mrf.mxu0  ;;  %v2055_v21 = vpop.f32.mrf.mxu1 }
  0xd4   :  { %v2057_v22 = vpop.f32.mrf.mxu0  ;;  %v2059_v9 = vpop.f32.mrf.mxu1 }
  0xd6   :  { %v2061_v23 = vpop.f32.mrf.mxu0  ;;  %v2063_v24 = vpop.f32.mrf.mxu1 }
  0xd8   :  { %v2065_v25 = vpop.f32.mrf.mxu0  ;;  %v2067_v26 = vpop.f32.mrf.mxu1 }
  0xd9   :  { %2182 = vst [vmem:[#allocation2_spill] sm:$0xff] %v2067_v26 }
  0xda   :  { %v2069_v27 = vpop.f32.mrf.mxu0  ;;  %v494_v28 = vpop.f32.mrf.mxu1 }
  0xdb   :  { %v673_v2 = vmax.f32 %v169_v13, %v494_v28 }
  0xdc   :  { %v1596_v29 = vpop.f32.mrf.mxu0  ;;  %v496_v30 = vpop.f32.mrf.mxu1 }
  0xdd   :  { %v674_v5 = vmax.f32 %v171_v15, %v496_v30 }
  0xde   :  { %v2071_v31 = vpop.f32.mrf.mxu0  ;;  %v498_v32 = vpop.f32.mrf.mxu1 }
  0xdf   :  { %v682_v10 = vmax.f32 %v2045_v17, %v498_v32 }
  0xe0   :  { %v1597_v33 = vpop.f32.mrf.mxu0  ;;  %v500_v34 = vpop.f32.mrf.mxu1 }
  0xe2   :  { %v537_v35 = vpop.f32.mrf.mxu0  ;;  %v2073_v36 = vpop.f32.mrf.mxu1 }
  0xe3   :  { %v675_v13 = vmax.f32 %v2041_v14, %v537_v35  ;;  %v677_v17 = vmax.f32 %v2053_v20, %v2073_v36 }
  0xe4   :  { %v2075_v37 = vpop.f32.mrf.mxu0  ;;  %v2077_v38 = vpop.f32.mrf.mxu1 }
  0xe5   :  { %v676_v32 = vmax.f32 %v2043_v16, %v2075_v37 }
  0xe6   :  { %v2079_v39 = vpop.f32.mrf.mxu0  ;;  %v2081_v40 = vpop.f32.mrf.mxu1 }
  0xe8   :  { %v2083_v41 = vpop.f32.mrf.mxu0  ;;  %v2085_v42 = vpop.f32.mrf.mxu1 }
  0xe9   :  { %v685_v20 = vmax.f32 %v2051_v19, %v2083_v41 }
  0xea   :  { %v2087_v43 = vpop.f32.mrf.mxu0  ;;  %v2089_v44 = vpop.f32.mrf.mxu1 }
  0xec   :  { %v2091_v45 = vpop.f32.mrf.mxu0  ;;  %v1604_v46 = vpop.f32.mrf.mxu1 }
  0xed   :  { %v683_v46 = vmax.f32 %v2049_v18, %v500_v34  ;;  %v678_v18 = vmax.f32 %v2057_v22, %v2077_v38 }
  0xee   :  { %v2093_v47 = vpop.f32.mrf.mxu0  ;;  %v2095_v48 = vpop.f32.mrf.mxu1 }
  0xf0   :  { %v2097_v49 = vpop.f32.mrf.mxu0  ;;  %v1605_v50 = vpop.f32.mrf.mxu1 }
  0xf2   :  { %v837_v51 = vpop.f32.mrf.mxu0  ;;  %v880_v52 = vpop.f32.mrf.mxu1 }
  0xf3   :  { %v1016_v6 = vmax.f32 %v673_v2, %v837_v51  ;;  %v1018_v34 = vmax.f32 %v675_v13, %v880_v52 }
  0xf4   :  { %v839_v53 = vpop.f32.mrf.mxu0  ;;  %v882_v54 = vpop.f32.mrf.mxu1 }
  0xf5   :  { %v1017_v11 = vmax.f32 %v674_v5, %v839_v53  ;;  %v1019_v37 = vmax.f32 %v676_v32, %v882_v54  ;;  %v681_v54 = vmax.f32 %v2069_v27, %v2089_v44 }
  0xf6   :  { %v841_v55 = vpop.f32.mrf.mxu0  ;;  %v884_v56 = vpop.f32.mrf.mxu1 }
  0xf7   :  { %v1025_v50 = vmax.f32 %v682_v10, %v841_v55  ;;  %v684_v55 = vmax.f32 %v2047_v1, %v2079_v39  ;;  %v687_v1 = vmax.f32 %v2065_v25, %v2085_v42  ;;  %v688_v10 = vmax.f32 %v2063_v24, %v2093_v47 }
  0xf8   :  { %v843_v57 = vpop.f32.mrf.mxu0  ;;  %v2099_v58 = vpop.f32.mrf.mxu1 }
  0xf9   :  { %v1026_v15 = vmax.f32 %v683_v46, %v843_v57 }
  0xfa   :  { %v923_v59 = vpop.f32.mrf.mxu0  ;;  %v2101_v60 = vpop.f32.mrf.mxu1 }
  0xfb   :  { %v1020_v36 = vmax.f32 %v677_v17, %v923_v59  ;;  %v1027_v59 = vmax.f32 %v684_v55, %v884_v56 }
  0xfc   :  { %v925_v61 = vpop.f32.mrf.mxu0  ;;  %v2103_v62 = vpop.f32.mrf.mxu1 }
  0xfd   :  { %v1021_v39 = vmax.f32 %v678_v18, %v925_v61 }
  0xfe   :  { %v927_v63 = vpop.f32.mrf.mxu0  ;;  %v2105_v0 = vpop.f32.mrf.mxu1 }
 0x100   :  { %v929_v3 = vpop.f32.mrf.mxu0  ;;  %v2107_v4 = vpop.f32.mrf.mxu1 }
 0x101   :  { %2183 = vst [vmem:[#allocation3_spill] sm:$0xff] %v2107_v4  ;;  %v1030_v61 = vmax.f32 %v687_v1, %v929_v3 }
 0x102   :  { %v2109_v7 = vpop.f32.mrf.mxu0  ;;  %v1180_v8 = vpop.f32.mrf.mxu1 }
 0x103   :  { %v1359_v12 = vmax.f32 %v1016_v6, %v1180_v8  ;;  %v680_v8 = vmax.f32 %v2059_v9, %v2091_v45  ;;  %v1024_v47 = vmax.f32 %v681_v54, %v2109_v7  ;;  %v2184_v7 = vld [vmem:[#allocation2_spill] sm:$0xff] }
 0x104   :  { %v1612_v29 = vpop.f32.mrf.mxu0  ;;  %v1182_v33 = vpop.f32.mrf.mxu1  ;;  %v689_v32 = vmax.f32 %v2184_v7, %v2097_v49 }
 0x105   :  { %v1360_v26 = vmax.f32 %v1017_v11, %v1182_v33  ;;  %v1377_v30 = vmax.f32 %v1359_v12, 0.0 }
 0x106   :  { %v2114_v28 = vpop.f32.mrf.mxu0  ;;  %v1184_v4 = vpop.f32.mrf.mxu1 }
 0x107   :  { %v1378_v51 = vmax.f32 %v1360_v26, 0.0  ;;  %v1368_v2 = vmax.f32 %v1025_v50, %v1184_v4  ;;  %v686_v26 = vmax.f32 %v2061_v23, %v2081_v40  ;;  %v679_v23 = vmax.f32 %v2055_v21, %v2087_v43 }
 0x108   :  { %v1613_v53 = vpop.f32.mrf.mxu0  ;;  %v1186_v5 = vpop.f32.mrf.mxu1  ;;  %v1028_v43 = vmax.f32 %v685_v20, %v2099_v58  ;;  %v690_v58 = vmax.f32 %v2071_v31, %v2095_v48  ;;  %v1023_v50 = vmax.f32 %v680_v8, %v2103_v62  ;;  %v2185_v55 = vld [vmem:[#allocation3_spill] sm:$0xff] }
 0x109   :  { %v1568_v14 = vpack.c.bf16 %v1378_v51, %v1377_v30  ;;  %v1369_v35 = vmax.f32 %v1026_v15, %v1186_v5  ;;  %v1386_v22 = vmax.f32 %v1368_v2, 0.0  ;;  %v1029_v25 = vmax.f32 %v686_v26, %v927_v63 }
 0x10a   :  { %v1223_v57 = vpop.f32.mrf.mxu0  ;;  %v1266_v16 = vpop.f32.mrf.mxu1  ;;  %v1022_v24 = vmax.f32 %v679_v23, %v2101_v60  ;;  %v1031_v53 = vmax.f32 %v688_v10, %v2105_v0  ;;  %v1033_v18 = vmax.f32 %v690_v58, %v2114_v28  ;;  %v1032_v26 = vmax.f32 %v689_v32, %v2185_v55 }
 0x10b   :  { %1451 = vst [vmem:[%s2181_s2] sm:$0xff] %v1568_v14  ;;  %v1387_v38 = vmax.f32 %v1369_v35, 0.0  ;;  %v1361_v52 = vmax.f32 %v1018_v34, %v1223_v57  ;;  %v1363_v40 = vmax.f32 %v1020_v36, %v1266_v16 }
 0x10c   :  { %v1225_v19 = vpop.f32.mrf.mxu0  ;;  %v1268_v41 = vpop.f32.mrf.mxu1 }
 0x10d   :  { %v1573_v4 = vpack.c.bf16 %v1387_v38, %v1386_v22  ;;  %v1362_v6 = vmax.f32 %v1019_v37, %v1225_v19  ;;  %v1364_v42 = vmax.f32 %v1021_v39, %v1268_v41  ;;  %v1379_v27 = vmax.f32 %v1361_v52, 0.0 }
 0x10e   :  { %v1227_v11 = vpop.f32.mrf.mxu0  ;;  %v1270_v21 = vpop.f32.mrf.mxu1  ;;  %v1381_v12 = vmax.f32 %v1363_v40, 0.0 }
 0x10f   :  { %1456 = vst [vmem:[%s2181_s2 + $0x24] sm:$0x11] %v1573_v4  ;;  %v1380_v44 = vmax.f32 %v1362_v6, 0.0  ;;  %v1370_v56 = vmax.f32 %v1027_v59, %v1227_v11  ;;  %v1382_v29 = vmax.f32 %v1364_v42, 0.0  ;;  %v1372_v9 = vmax.f32 %v1029_v25, %v1270_v21 }
 0x110   :  { %v1229_v45 = vpop.f32.mrf.mxu0  ;;  %v1272_v33 = vpop.f32.mrf.mxu1 }
 0x111   :  { %v1569_v63 = vpack.c.bf16 %v1380_v44, %v1379_v27  ;;  %v1371_v46 = vmax.f32 %v1028_v43, %v1229_v45  ;;  %v1570_v13 = vpack.c.bf16 %v1382_v29, %v1381_v12  ;;  %v1373_v15 = vmax.f32 %v1030_v61, %v1272_v33 }
 0x112   :  { %v1309_v30 = vpop.f32.mrf.mxu0  ;;  %v1352_v3 = vpop.f32.mrf.mxu1  ;;  %v1388_v51 = vmax.f32 %v1370_v56, 0.0  ;;  %v1390_v31 = vmax.f32 %v1372_v9, 0.0 }
 0x113   :  { %1452 = vst [vmem:[%s2181_s2 + $0x8] sm:$0xff] %v1569_v63  ;;  %v1389_v2 = vmax.f32 %v1371_v46, 0.0  ;;  %v1365_v60 = vmax.f32 %v1022_v24, %v1309_v30  ;;  %v1367_v17 = vmax.f32 %v1024_v47, %v1352_v3  ;;  %1453 = vst [vmem:[%s2181_s2 + $0x10] sm:$0xff] %v1570_v13  ;;  %v1391_v48 = vmax.f32 %v1373_v15, 0.0 }
 0x114   :  { %v1311_v62 = vpop.f32.mrf.mxu0  ;;  %v1620_v5 = vpop.f32.mrf.mxu1 }
 0x115   :  { %v1574_v34 = vpack.c.bf16 %v1389_v2, %v1388_v51  ;;  %v1385_v14 = vmax.f32 %v1367_v17, 0.0  ;;  %v1366_v35 = vmax.f32 %v1023_v50, %v1311_v62  ;;  %v1575_v20 = vpack.c.bf16 %v1391_v48, %v1390_v31 }
 0x116   :  { %v1383_v36 = vmax.f32 %v1365_v60, 0.0  ;;  %v1313_v49 = vpop.f32.mrf.mxu0  ;;  %v1355_v57 = vpop.f32.mrf.mxu1 }
 0x117   :  { %1457 = vst [vmem:[%s2181_s2 + $0x2c] sm:$0x11] %v1574_v34  ;;  %v1572_v0 = vpack.c.bf16 %v1385_v14, %v1385_v14  ;;  %v1384_v16 = vmax.f32 %v1366_v35, 0.0  ;;  %v1374_v37 = vmax.f32 %v1031_v53, %v1313_v49  ;;  %v1376_v22 = vmax.f32 %v1033_v18, %v1355_v57  ;;  %1458 = vst [vmem:[%s2181_s2 + $0x34] sm:$0x11] %v1575_v20 }
 0x118   :  { %v1315_v28 = vpop.f32.mrf.mxu0  ;;  %v1621_v38 = vpop.f32.mrf.mxu1 }
 0x119   :  { %1455 = vst [vmem:[%s2181_s2 + $0x20] sm:$0xf] %v1572_v0  ;;  %v1571_v52 = vpack.c.bf16 %v1384_v16, %v1383_v36  ;;  %v1394_v1 = vmax.f32 %v1376_v22, 0.0  ;;  %v1375_v23 = vmax.f32 %v1032_v26, %v1315_v28  ;;  %v1392_v39 = vmax.f32 %v1374_v37, 0.0 }
 0x11b   :  { %1454 = vst [vmem:[%s2181_s2 + $0x18] sm:$0xff] %v1571_v52  ;;  %v1577_v40 = vpack.c.bf16 %v1394_v1, %v1394_v1  ;;  %v1393_v19 = vmax.f32 %v1375_v23, 0.0 }
 0x11d   :  { %1460 = vst [vmem:[%s2181_s2 + $0x44] sm:$0x1] %v1577_v40  ;;  %v1576_v41 = vpack.c.bf16 %v1393_v19, %v1392_v39 }
 0x11f   :  { %1459 = vst [vmem:[%s2181_s2 + $0x3c] sm:$0x11] %v1576_v41 }

// kernel: net_forward.3
= control target key start
LH: loop header
LB: loop body
LE: loop exit
PB: predicated region body
PF: predicated region fallthrough
CT: control target
= control target key end

     0   :  { %vm4400_vm0 = vmmov 0   ;;  %vm808_vm1 = vcmask 1043456   ;;  %s4402_s10 = smov 112   ;;  %vm786_vm2 = vcmask 162816   ;;  %s4404_s17 = smov 96   ;;  %vm3148_vm3 = vcmask 408576   ;;  %s5565_s0 = inlined_call_operand.vmem [shape: bf16[256,512], index: 0, kind: input, shape index: {}]   ;;  %s5566_s1 = inlined_call_operand.vmem [shape: bf16[20,256], index: 1, kind: input, shape index: {}]   ;;  %s5567_s2 = inlined_call_operand.vmem [shape: f32[16,50,20], index: 2, kind: input, shape index: {}]   ;;  %s5568_s3 = inlined_call_operand.vmem [shape: f32[50,1], index: 3, kind: input, shape index: {}]   ;;  %s5569_s5 = inlined_call_operand.vmem [shape: f32[10,1], index: 5, kind: input, shape index: {}]   ;;  %s5570_s4 = inlined_call_operand.vmem [shape: f32[10,50], index: 4, kind: input, shape index: {}]   ;;  %s5571_s6 = inlined_call_operand.vmem [shape: f32[10,8], index: 6, kind: output, shape index: {}]  }
   0x1   :  { %v4324_v0 = vld [vmem:[%s5565_s0 + $0x1e0] ss:$16 sps:$4 sm:$0xff]   ;;  %v4325_v1 = vld [vmem:[%s5565_s0 + $0x1e4] ss:$16 sps:$4 sm:$0xff]   ;;  %v4359_v34 = vld [vmem:[%s5565_s0 + $0x1e8] ss:$16 sps:$4 sm:$0xff]  }
   0x2   :  { %3574 = vmatprep.subr.bf16.mxu0 %v4324_v0  ;;  %v4326_v2 = vld [vmem:[%s5565_s0 + $0xe0] ss:$16 sps:$4 sm:$0xff]   ;;  %3602 = vmatprep.subr.bf16.mxu1 %v4325_v1  ;;  %v4327_v3 = vld [vmem:[%s5565_s0 + $0xe4] ss:$16 sps:$4 sm:$0xff]   ;;  %v4360_v35 = vld [vmem:[%s5565_s0 + $0x1ec] ss:$16 sps:$4 sm:$0xff]  }
   0x3   :  { %3575 = vmatpush3.bf16.msra.mxu0 %v4326_v2  ;;  %v4328_v4 = vld [vmem:[%s5565_s0 + $0x1c0] ss:$16 sps:$4 sm:$0xff]   ;;  %3603 = vmatpush3.bf16.msra.mxu1 %v4327_v3  ;;  %v4329_v5 = vld [vmem:[%s5565_s0 + $0x1c4] ss:$16 sps:$4 sm:$0xff]   ;;  %v4361_v36 = vld [vmem:[%s5565_s0 + $0xe8] ss:$16 sps:$4 sm:$0xff]  }
   0x4   :  { %3576 = vmatprep.subr.bf16.mxu0 %v4328_v4  ;;  %v4330_v6 = vld [vmem:[%s5565_s0 + $0xc0] ss:$16 sps:$4 sm:$0xff]   ;;  %3604 = vmatprep.subr.bf16.mxu1 %v4329_v5  ;;  %v4331_v7 = vld [vmem:[%s5565_s0 + $0xc4] ss:$16 sps:$4 sm:$0xff]   ;;  %v4362_v37 = vld [vmem:[%s5565_s0 + $0xec] ss:$16 sps:$4 sm:$0xff]  }
   0x5   :  { %v4332_v8 = vld [vmem:[%s5565_s0 + $0x1a0] ss:$16 sps:$4 sm:$0xff]   ;;  %v4333_v9 = vld [vmem:[%s5565_s0 + $0x1a4] ss:$16 sps:$4 sm:$0xff]   ;;  %v4363_v38 = vld [vmem:[%s5565_s0 + $0x1c8] ss:$16 sps:$4 sm:$0xff]  }
   0x6   :  { %v4334_v10 = vld [vmem:[%s5565_s0 + $0xa0] ss:$16 sps:$4 sm:$0xff]   ;;  %v4335_v11 = vld [vmem:[%s5565_s0 + $0xa4] ss:$16 sps:$4 sm:$0xff]   ;;  %v4364_v39 = vld [vmem:[%s5565_s0 + $0x1cc] ss:$16 sps:$4 sm:$0xff]  }
   0x7   :  { %3577 = vmatpush3.bf16.msra.mxu0 %v4330_v6  ;;  %3605 = vmatpush3.bf16.msra.mxu1 %v4331_v7  ;;  %v4336_v12 = vld [vmem:[%s5565_s0 + $0x180] ss:$16 sps:$4 sm:$0xff]   ;;  %v4337_v13 = vld [vmem:[%s5565_s0 + $0x184] ss:$16 sps:$4 sm:$0xff]   ;;  %v4365_v40 = vld [vmem:[%s5565_s0 + $0xc8] ss:$16 sps:$4 sm:$0xff]  }
   0x8   :  { %3578 = vmatprep.subr.bf16.mxu0 %v4332_v8  ;;  %3606 = vmatprep.subr.bf16.mxu1 %v4333_v9  ;;  %v4338_v14 = vld [vmem:[%s5565_s0 + $0x80] ss:$16 sps:$4 sm:$0xff]   ;;  %v4339_v15 = vld [vmem:[%s5565_s0 + $0x84] ss:$16 sps:$4 sm:$0xff]   ;;  %v4366_v41 = vld [vmem:[%s5565_s0 + $0xcc] ss:$16 sps:$4 sm:$0xff]  }
   0x9   :  { %v4340_v16 = vld [vmem:[%s5565_s0 + $0x160] ss:$16 sps:$4 sm:$0xff]   ;;  %v4341_v17 = vld [vmem:[%s5565_s0 + $0x164] ss:$16 sps:$4 sm:$0xff]   ;;  %v4367_v42 = vld [vmem:[%s5565_s0 + $0x1a8] ss:$16 sps:$4 sm:$0xff]  }
   0xa   :  { %v4342_v18 = vld [vmem:[%s5565_s0 + $0x60] ss:$16 sps:$4 sm:$0xff]   ;;  %v4343_v19 = vld [vmem:[%s5565_s0 + $0x64] ss:$16 sps:$4 sm:$0xff]   ;;  %v4368_v43 = vld [vmem:[%s5565_s0 + $0x1ac] ss:$16 sps:$4 sm:$0xff]  }
   0xb   :  { %3579 = vmatpush3.bf16.msra.mxu0 %v4334_v10  ;;  %3607 = vmatpush3.bf16.msra.mxu1 %v4335_v11  ;;  %v4344_v20 = vld [vmem:[%s5565_s0 + $0x140] ss:$16 sps:$4 sm:$0xff]   ;;  %v4345_v21 = vld [vmem:[%s5565_s0 + $0x144] ss:$16 sps:$4 sm:$0xff]   ;;  %v4369_v44 = vld [vmem:[%s5565_s0 + $0xa8] ss:$16 sps:$4 sm:$0xff]  }
   0xc   :  { %3580 = vmatprep.subr.bf16.mxu0 %v4336_v12  ;;  %3608 = vmatprep.subr.bf16.mxu1 %v4337_v13  ;;  %v4346_v22 = vld [vmem:[%s5565_s0 + $0x40] ss:$16 sps:$4 sm:$0xff]   ;;  %v4347_v23 = vld [vmem:[%s5565_s0 + $0x44] ss:$16 sps:$4 sm:$0xff]   ;;  %v4370_v45 = vld [vmem:[%s5565_s0 + $0xac] ss:$16 sps:$4 sm:$0xff]  }
   0xd   :  { %v4348_v24 = vld [vmem:[%s5565_s0 + $0x120] ss:$16 sps:$4 sm:$0xff]   ;;  %v4349_v25 = vld [vmem:[%s5565_s0 + $0x124] ss:$16 sps:$4 sm:$0xff]   ;;  %v4371_v46 = vld [vmem:[%s5565_s0 + $0x188] ss:$16 sps:$4 sm:$0xff]  }
   0xe   :  { %v4350_v26 = vld [vmem:[%s5565_s0 + $0x20] ss:$16 sps:$4 sm:$0xff]   ;;  %v4351_v27 = vld [vmem:[%s5565_s0 + $0x24] ss:$16 sps:$4 sm:$0xff]   ;;  %v4372_v47 = vld [vmem:[%s5565_s0 + $0x18c] ss:$16 sps:$4 sm:$0xff]  }
   0xf   :  { %3581 = vmatpush3.bf16.msra.mxu0 %v4338_v14  ;;  %3609 = vmatpush3.bf16.msra.mxu1 %v4339_v15  ;;  %v4352_v28 = vld [vmem:[%s5565_s0 + $0x100] ss:$16 sps:$4 sm:$0xff]   ;;  %v4353_v29 = vld [vmem:[%s5565_s0 + $0x104] ss:$16 sps:$4 sm:$0xff]   ;;  %v4373_v48 = vld [vmem:[%s5565_s0 + $0x88] ss:$16 sps:$4 sm:$0xff]  }
  0x10   :  { %3582 = vmatprep.subr.bf16.mxu0 %v4340_v16  ;;  %3610 = vmatprep.subr.bf16.mxu1 %v4341_v17  ;;  %v4354_v30 = vld [vmem:[%s5565_s0] ss:$16 sps:$4 sm:$0xff]   ;;  %v4355_v31 = vld [vmem:[%s5565_s0 + $0x4] ss:$16 sps:$4 sm:$0xff]   ;;  %v4374_v49 = vld [vmem:[%s5565_s0 + $0x8c] ss:$16 sps:$4 sm:$0xff]  }
  0x11   :  { %v4551_v32 = vld [vmem:[%s5566_s1 + $0x4] ss:$8 sps:$4 sm:$0xff]   ;;  %v4556_v33 = vld [vmem:[%s5566_s1] ss:$8 sps:$4 sm:$0xff]   ;;  %v26_v52 = vld [vmem:[%s5566_s1 + $0x10] sm:$0x33] }
  0x12   :  { %204 = vmatprep.mubr.bf16.mxu0 %v4551_v32  ;;  %380 = vmatprep.mubr.bf16.mxu1 %v4551_v32  ;;  %v4375_v50 = vld [vmem:[%s5565_s0 + $0x168] ss:$16 sps:$4 sm:$0xff]   ;;  %v4376_v51 = vld [vmem:[%s5565_s0 + $0x16c] ss:$16 sps:$4 sm:$0xff]   ;;  %v3273_v53 = vcombine.high %v26_v52, %v26_v52  ;;  %v3272_v55 = vcombine.low %v26_v52, %v26_v52  ;;  %v4399_v5 = vmov 0.0   ;;  %s4403_s1 = smov 104  }
  0x13   :  { %3583 = vmatpush3.bf16.msra.mxu0 %v4342_v18  ;;  %3611 = vmatpush3.bf16.msra.mxu1 %v4343_v19  ;;  %v4378_v54 = vld [vmem:[%s5565_s0 + $0x68] ss:$16 sps:$4 sm:$0xff]   ;;  %v4379_v56 = vld [vmem:[%s5565_s0 + $0x6c] ss:$16 sps:$4 sm:$0xff]   ;;  %s4405_s20 = smov 88   ;;  %s4406_s25 = smov 80  }
  0x14   :  { %3584 = vmatprep.subr.bf16.mxu0 %v4344_v20  ;;  %3612 = vmatprep.subr.bf16.mxu1 %v4345_v21  ;;  %v4381_v57 = vld [vmem:[%s5565_s0 + $0x148] ss:$16 sps:$4 sm:$0xff]   ;;  %v4382_v58 = vld [vmem:[%s5565_s0 + $0x14c] ss:$16 sps:$4 sm:$0xff]   ;;  %s4407_s28 = smov 72   ;;  %s4408_s29 = smov 64  }
  0x15   :  { %v4383_v59 = vld [vmem:[%s5565_s0 + $0x48] ss:$16 sps:$4 sm:$0xff]   ;;  %v4384_v60 = vld [vmem:[%s5565_s0 + $0x4c] ss:$16 sps:$4 sm:$0xff]   ;;  %s4409_s30 = smov 56   ;;  %s4410_s7 = smov 48  }
  0x16   :  { %v4385_v61 = vld [vmem:[%s5565_s0 + $0x128] ss:$16 sps:$4 sm:$0xff]   ;;  %v4386_v62 = vld [vmem:[%s5565_s0 + $0x12c] ss:$16 sps:$4 sm:$0xff]   ;;  %s4411_s8 = smov 40   ;;  %s4412_s9 = smov 32  }
  0x17   :  { %3585 = vmatpush3.bf16.msra.mxu0 %v4346_v22  ;;  %3613 = vmatpush3.bf16.msra.mxu1 %v4347_v23  ;;  %v4387_v63 = vld [vmem:[%s5565_s0 + $0x28] ss:$16 sps:$4 sm:$0xff]   ;;  %v4388_v0 = vld [vmem:[%s5565_s0 + $0x2c] ss:$16 sps:$4 sm:$0xff]   ;;  %s4415_s11 = smov 8   ;;  %vm3155_vm4 = vcmask 1041408  }
  0x18   :  { %3586 = vmatprep.subr.bf16.mxu0 %v4348_v24  ;;  %3614 = vmatprep.subr.bf16.mxu1 %v4349_v25  ;;  %v4389_v1 = vld [vmem:[%s5565_s0 + $0x108] ss:$16 sps:$4 sm:$0xff]   ;;  %v4390_v2 = vld [vmem:[%s5565_s0 + $0x10c] ss:$16 sps:$4 sm:$0xff]   ;;  %vm3236_vm5 = vcmask 58368   ;;  %vm3234_vm6 = vcmask 64512  }
  0x19   :  { %v4391_v3 = vld [vmem:[%s5565_s0 + $0x8] ss:$16 sps:$4 sm:$0xff]   ;;  %v4392_v4 = vld [vmem:[%s5565_s0 + $0xc] ss:$16 sps:$4 sm:$0xff]   ;;  %s4401_s0 = smov 120  }
  0x1b   :  { %3587 = vmatpush3.bf16.msra.mxu0 %v4350_v26  ;;  %3615 = vmatpush3.bf16.msra.mxu1 %v4351_v27 }
  0x1c   :  { %3588 = vmatprep.subr.bf16.mxu0 %v4352_v28  ;;  %3616 = vmatprep.subr.bf16.mxu1 %v4353_v29 }
  0x1f   :  { %3589 = vmatpush3.bf16.msra.mxu0 %v4354_v30  ;;  %3617 = vmatpush3.bf16.msra.mxu1 %v4355_v31 }
  0x20   :  { %3630 = vmatprep.subr.bf16.mxu0 %v4359_v34  ;;  %3658 = vmatprep.subr.bf16.mxu1 %v4360_v35 }
  0x22   :  { %205 = vmatmul.mubr.bf16.vlgmr.msra.gmra.mxu0 %v4556_v33  ;;  %381 = vmatmul.mubr.bf16.vlgmr.msra.gmra.mxu1 %v4556_v33 }
  0x23   :  { %3631 = vmatpush3.bf16.msra.mxu0 %v4361_v36  ;;  %3659 = vmatpush3.bf16.msra.mxu1 %v4362_v37 }
  0x24   :  { %3632 = vmatprep.subr.bf16.mxu0 %v4363_v38  ;;  %3660 = vmatprep.subr.bf16.mxu1 %v4364_v39 }
  0x25   :  { %212 = vmatprep.mubr.bf16.mxu0 %v3273_v53  ;;  %388 = vmatprep.mubr.bf16.mxu1 %v3273_v53 }
  0x27   :  { %3633 = vmatpush3.bf16.msra.mxu0 %v4365_v40  ;;  %3661 = vmatpush3.bf16.msra.mxu1 %v4366_v41 }
  0x28   :  { %3634 = vmatprep.subr.bf16.mxu0 %v4367_v42  ;;  %3662 = vmatprep.subr.bf16.mxu1 %v4368_v43 }
  0x2a   :  { %213 = vmatmul.mubr.bf16.gmra.mxu0 %v3272_v55  ;;  %389 = vmatmul.mubr.bf16.gmra.mxu1 %v3272_v55 }
  0x2b   :  { %3635 = vmatpush3.bf16.msra.mxu0 %v4369_v44  ;;  %3663 = vmatpush3.bf16.msra.mxu1 %v4370_v45 }
  0x2c   :  { %3636 = vmatprep.subr.bf16.mxu0 %v4371_v46  ;;  %3664 = vmatprep.subr.bf16.mxu1 %v4372_v47 }
  0x2d   :  { %559 = vmatprep.mubr.bf16.mxu0 %v4551_v32  ;;  %738 = vmatprep.mubr.bf16.mxu1 %v4551_v32 }
  0x2f   :  { %3637 = vmatpush3.bf16.msra.mxu0 %v4373_v48  ;;  %3665 = vmatpush3.bf16.msra.mxu1 %v4374_v49 }
  0x30   :  { %3638 = vmatprep.subr.bf16.mxu0 %v4375_v50  ;;  %3666 = vmatprep.subr.bf16.mxu1 %v4376_v51 }
  0x33   :  { %3639 = vmatpush3.bf16.msra.mxu0 %v4378_v54  ;;  %3667 = vmatpush3.bf16.msra.mxu1 %v4379_v56 }
  0x34   :  { %3640 = vmatprep.subr.bf16.mxu0 %v4381_v57  ;;  %3668 = vmatprep.subr.bf16.mxu1 %v4382_v58 }
  0x37   :  { %3641 = vmatpush3.bf16.msra.mxu0 %v4383_v59  ;;  %3669 = vmatpush3.bf16.msra.mxu1 %v4384_v60 }
  0x38   :  { %3642 = vmatprep.subr.bf16.mxu0 %v4385_v61  ;;  %3670 = vmatprep.subr.bf16.mxu1 %v4386_v62  ;;  %v760_v62 = vld [vmem:[%s5567_s2] sm:$0xff] }
  0x3b   :  { %3643 = vmatpush3.bf16.msra.mxu0 %v4387_v63  ;;  %3671 = vmatpush3.bf16.msra.mxu1 %v4388_v0  ;;  %v761_v63 = vld [vmem:[%s5567_s2 + $0x8] sm:$0xff]  ;;  %v762_v0 = vld [vmem:[%s5567_s2 + $0x10] sm:$0xff] }
  0x3c   :  { %3644 = vmatprep.subr.bf16.mxu0 %v4389_v1  ;;  %3672 = vmatprep.subr.bf16.mxu1 %v4390_v2  ;;  %v763_v1 = vld [vmem:[%s5567_s2 + $0x18] sm:$0xff]  ;;  %v764_v2 = vld [vmem:[%s5567_s2 + $0x20] sm:$0xff] }
  0x3f   :  { %3645 = vmatpush3.bf16.msra.mxu0 %v4391_v3  ;;  %3673 = vmatpush3.bf16.msra.mxu1 %v4392_v4  ;;  %v765_v3 = vld [vmem:[%s5567_s2 + $0x28] sm:$0xff]  ;;  %v766_v4 = vld [vmem:[%s5567_s2 + $0x30] sm:$0x3] }
  0x40   :  { %3882 = vmatprep.subr.mxu1 %v4399_v5  ;;  %3855 = vmatprep.subr.mxu0 %v4399_v5 }
  0x42   :  { %560 = vmatmul.mubr.bf16.vlgmr.msra.gmra.mxu0 %v4556_v33  ;;  %739 = vmatmul.mubr.bf16.vlgmr.msra.gmra.mxu1 %v4556_v33 }
  0x43   :  { %567 = vmatprep.mubr.bf16.mxu0 %v3273_v53  ;;  %746 = vmatprep.mubr.bf16.mxu1 %v3273_v53 }
  0x4a   :  { %568 = vmatmul.mubr.bf16.gmra.mxu0 %v3272_v55  ;;  %747 = vmatmul.mubr.bf16.gmra.mxu1 %v3272_v55 }
  0x4b   :  { %3888 = vmatprep.mubr.msk.f32.mxu1 %vm4400_vm0, %v4399_v5  ;;  %3861 = vmatprep.mubr.msk.f32.mxu0 %vm4400_vm0, %v4399_v5 }
  0xe2   :  { %v3590_v6 = vpop.f32.mrf.mxu0  ;;  %v3618_v7 = vpop.f32.mrf.mxu1 }
  0xe4   :  { %v3591_v8 = vpop.f32.mrf.mxu0  ;;  %v3619_v9 = vpop.f32.mrf.mxu1 }
  0xe5   :  { %v3592_v22 = vadd.f32 %v3591_v8, %v3590_v6  ;;  %v3620_v23 = vadd.f32 %v3619_v9, %v3618_v7 }
  0xe6   :  { %v3593_v10 = vpop.f32.mrf.mxu0  ;;  %v3621_v11 = vpop.f32.mrf.mxu1 }
  0xe7   :  { %v396_v27 = vmax.f32 %v3592_v22, %v3620_v23  ;;  %v3377_v23 = vld [vmem:[%s5567_s2 + $0xb0] sm:$0xff] }
  0xe8   :  { %v3594_v12 = vpop.f32.mrf.mxu0  ;;  %v3622_v13 = vpop.f32.mrf.mxu1 }
  0xe9   :  { %v3595_v31 = vadd.f32 %v3594_v12, %v3593_v10  ;;  %v3623_v32 = vadd.f32 %v3622_v13, %v3621_v11  ;;  %v3338_v11 = vld [vmem:[%s5567_s2 + $0x38] sm:$0xff] }
  0xea   :  { %v3596_v14 = vpop.f32.mrf.mxu0  ;;  %v3624_v16 = vpop.f32.mrf.mxu1 }
  0xeb   :  { %v397_v43 = vmax.f32 %v3595_v31, %v3623_v32  ;;  %v3344_v31 = vld [vmem:[%s5567_s2 + $0x68] sm:$0x3] }
  0xec   :  { %v3597_v15 = vpop.f32.mrf.mxu0  ;;  %v3625_v18 = vpop.f32.mrf.mxu1  ;;  %v3380_v32 = vld [vmem:[%s5567_s2 + $0xc8] sm:$0xff] }
  0xed   :  { %v3598_v37 = vadd.f32 %v3597_v15, %v3596_v14  ;;  %v3626_v38 = vadd.f32 %v3625_v18, %v3624_v16  ;;  %v3339_v14 = vld [vmem:[%s5567_s2 + $0x40] sm:$0xff]  ;;  %v3376_v18 = vld [vmem:[%s5567_s2 + $0xa8] sm:$0xff] }
  0xee   :  { %v3599_v17 = vpop.f32.mrf.mxu0  ;;  %v3627_v20 = vpop.f32.mrf.mxu1 }
  0xef   :  { %v398_v47 = vmax.f32 %v3598_v37, %v3626_v38  ;;  %v3340_v17 = vld [vmem:[%s5567_s2 + $0x48] sm:$0xff]  ;;  %v3382_v38 = vld [vmem:[%s5567_s2 + $0xd8] sm:$0x3] }
  0xf0   :  { %v3600_v19 = vpop.f32.mrf.mxu0  ;;  %v3628_v21 = vpop.f32.mrf.mxu1 }
  0xf1   :  { %v3341_v21 = vld [vmem:[%s5567_s2 + $0x50] sm:$0xff] }
 0x102   :  { %v3646_v24 = vpop.f32.mrf.mxu0  ;;  %v3674_v25 = vpop.f32.mrf.mxu1 }
 0x104   :  { %v3647_v26 = vpop.f32.mrf.mxu0  ;;  %v3675_v29 = vpop.f32.mrf.mxu1 }
 0x105   :  { %v3648_v28 = vadd.f32 %v3647_v26, %v3646_v24  ;;  %v3676_v34 = vadd.f32 %v3675_v29, %v3674_v25  ;;  %v3342_v25 = vld [vmem:[%s5567_s2 + $0x58] sm:$0xff] }
 0x106   :  { %v3649_v30 = vpop.f32.mrf.mxu0  ;;  %v3677_v35 = vpop.f32.mrf.mxu1 }
 0x107   :  { %v575_v33 = vmax.f32 %v396_v27, %v3648_v28  ;;  %v3378_v27 = vld [vmem:[%s5567_s2 + $0xb8] sm:$0xff]  ;;  %v3343_v28 = vld [vmem:[%s5567_s2 + $0x60] sm:$0xff] }
 0x108   :  { %v3650_v36 = vpop.f32.mrf.mxu0  ;;  %v3678_v41 = vpop.f32.mrf.mxu1 }
 0x109   :  { %v754_v39 = vmax.f32 %v575_v33, %v3676_v34  ;;  %v3651_v40 = vadd.f32 %v3650_v36, %v3649_v30  ;;  %v3679_v52 = vadd.f32 %v3678_v41, %v3677_v35  ;;  %v3379_v30 = vld [vmem:[%s5567_s2 + $0xc0] sm:$0xff]  ;;  %v3361_v33 = vld [vmem:[%s5567_s2 + $0x70] sm:$0xff]  ;;  %v3362_v36 = vld [vmem:[%s5567_s2 + $0x78] sm:$0xff] }
 0x10a   :  { %v3652_v42 = vpop.f32.mrf.mxu0  ;;  %v3680_v45 = vpop.f32.mrf.mxu1  ;;  %v3381_v34 = vld [vmem:[%s5567_s2 + $0xd0] sm:$0xff]  ;;  %v3406_v41 = vld [vmem:[%s5567_s2 + $0x118] sm:$0xff] }
 0x10b   :  { %v4671_v44 = vmax.f32 %v754_v39, 0.0  ;;  %v576_v48 = vmax.f32 %v397_v43, %v3651_v40  ;;  %v3363_v39 = vld [vmem:[%s5567_s2 + $0x80] sm:$0xff]  ;;  %v3364_v43 = vld [vmem:[%s5567_s2 + $0x88] sm:$0xff] }
 0x10c   :  { %v3653_v46 = vpop.f32.mrf.mxu0  ;;  %v3681_v50 = vpop.f32.mrf.mxu1 }
 0x10d   :  { %v3654_v49 = vadd.f32 %v3653_v46, %v3652_v42  ;;  %778 = vrot.lane.b32.xlu1 %v4671_v44, %s4401_s0  ;;  %v3682_v54 = vadd.f32 %v3681_v50, %v3680_v45  ;;  %v755_v57 = vmax.f32 %v576_v48, %v3679_v52  ;;  %v3365_v46 = vld [vmem:[%s5567_s2 + $0x90] sm:$0xff]  ;;  %v3408_v48 = vld [vmem:[%s5567_s2 + $0x128] sm:$0xff]  ;;  %v3410_v52 = vld [vmem:[%s5567_s2 + $0x138] sm:$0xff] }
 0x10e   :  { %v3655_v51 = vpop.f32.mrf.mxu0  ;;  %v3683_v55 = vpop.f32.mrf.mxu1  ;;  %v3409_v50 = vld [vmem:[%s5567_s2 + $0x130] sm:$0xff] }
 0x10f   :  { %v577_v53 = vmax.f32 %v398_v47, %v3654_v49  ;;  %v4676_v61 = vmax.f32 %v755_v57, 0.0  ;;  %v3366_v49 = vld [vmem:[%s5567_s2 + $0x98] sm:$0xff]  ;;  %v3367_v51 = vld [vmem:[%s5567_s2 + $0xa0] sm:$0x3] }
 0x110   :  { %v3656_v56 = vpop.f32.mrf.mxu0  ;;  %v3684_v59 = vpop.f32.mrf.mxu1 }
 0x111   :  { %v756_v58 = vmax.f32 %v577_v53, %v3682_v54  ;;  %v3391_v53 = vld [vmem:[%s5567_s2 + $0xe0] sm:$0xff]  ;;  %v3392_v56 = vld [vmem:[%s5567_s2 + $0xe8] sm:$0xff]  ;;  %v3393_v59 = vld [vmem:[%s5567_s2 + $0xf0] sm:$0xff] }
 0x112   :  { %v3411_v54 = vld [vmem:[%s5567_s2 + $0x140] sm:$0xff] }
 0x113   :  { %v4674_v60 = vmax.f32 %v756_v58, 0.0  ;;  %v3412_v58 = vld [vmem:[%s5567_s2 + $0x148] sm:$0x3] }
 0x115   :  { %782 = vrot.lane.b32.xlu0 %v4674_v60, %s4401_s0  ;;  %3883 = vmatpush3.msk.msra.mxu1 %vm808_vm1, %v4674_v60 }
 0x116   :  { %1046 = vrot.lane.b32.xlu1 %v4674_v60, %s4402_s10  ;;  %3884 = vmatprep.subr.mxu1 %v4399_v5 }
 0x117   :  { %3885 = vmatpush3.msra.mxu1 %v4676_v61 }
 0x118   :  { %3886 = vmatprep.subr.mxu1 %v4399_v5 }
 0x119   :  { %780 = vrot.lane.b32.xlu0 %v4676_v61, %s4401_s0  ;;  %3887 = vmatpush3.msra.mxu1 %v4671_v44  ;;  %s4413_s0 = smov 24  }
 0x11a   :  { %1192 = vrot.lane.b32.xlu1 %v4674_v60, %s4403_s1  ;;  %3889 = vmatmul.mubr.msk.f32.vlgmr.msra.gmra.mxu1 %vm786_vm2, %v760_v62 }
 0x11b   :  { %3891 = vmatprep.mubr.msk.f32.mxu1 %vm4400_vm0, %v4399_v5  ;;  %3936 = vmatprep.subr.mxu1 %v4399_v5 }
 0x11d   :  { %1044 = vrot.lane.b32.xlu0 %v4676_v61, %s4402_s10 }
 0x11e   :  { %1190 = vrot.lane.b32.xlu1 %v4676_v61, %s4403_s1  ;;  %3892 = vmatmul.mubr.msk.f32.gmra.mxu1 %vm786_vm2, %v761_v63  ;;  %v3394_v63 = vld [vmem:[%s5567_s2 + $0xf8] sm:$0xff] }
 0x11f   :  { %3894 = vmatprep.mubr.msk.f32.mxu1 %vm4400_vm0, %v4399_v5 }
 0x121   :  { %1042 = vrot.lane.b32.xlu0 %v4671_v44, %s4402_s10  ;;  %s4414_s10 = smov 16  }
 0x122   :  { %1338 = vrot.lane.b32.xlu1 %v4674_v60, %s4404_s17  ;;  %3895 = vmatmul.mubr.msk.f32.gmra.mxu1 %vm786_vm2, %v762_v0  ;;  %v3437_v0 = vld [vmem:[%s5567_s2 + $0x190] sm:$0xff] }
 0x123   :  { %3897 = vmatprep.mubr.msk.f32.mxu1 %vm4400_vm0, %v4399_v5 }
 0x125   :  { %1188 = vrot.lane.b32.xlu0 %v4671_v44, %s4403_s1 }
 0x126   :  { %1484 = vrot.lane.b32.xlu1 %v4674_v60, %s4405_s20  ;;  %3898 = vmatmul.mubr.msk.f32.gmra.mxu1 %vm786_vm2, %v763_v1 }
 0x127   :  { %3900 = vmatprep.mubr.msk.f32.mxu1 %vm4400_vm0, %v4399_v5 }
 0x129   :  { %1336 = vrot.lane.b32.xlu0 %v4676_v61, %s4404_s17 }
 0x12a   :  { %1482 = vrot.lane.b32.xlu1 %v4676_v61, %s4405_s20  ;;  %3901 = vmatmul.mubr.msk.f32.gmra.mxu1 %vm786_vm2, %v764_v2  ;;  %v3395_v2 = vld [vmem:[%s5567_s2 + $0x100] sm:$0xff] }
 0x12b   :  { %3903 = vmatprep.mubr.msk.f32.mxu1 %vm4400_vm0, %v4399_v5 }
 0x12d   :  { %1334 = vrot.lane.b32.xlu0 %v4671_v44, %s4404_s17 }
 0x12e   :  { %1630 = vrot.lane.b32.xlu1 %v4674_v60, %s4406_s25  ;;  %3904 = vmatmul.mubr.msk.f32.gmra.mxu1 %vm786_vm2, %v765_v3 }
 0x12f   :  { %3906 = vmatprep.mubr.msk.f32.mxu1 %vm4400_vm0, %v4399_v5 }
 0x131   :  { %1480 = vrot.lane.b32.xlu0 %v4671_v44, %s4405_s20 }
 0x132   :  { %1776 = vrot.lane.b32.xlu1 %v4674_v60, %s4407_s28  ;;  %3907 = vmatmul.mubr.msk.f32.gmra.mxu1 %vm786_vm2, %v766_v4  ;;  %v3438_v4 = vld [vmem:[%s5567_s2 + $0x198] sm:$0xff] }
 0x133   :  { %3942 = vmatprep.mubr.msk.f32.mxu1 %vm4400_vm0, %v4399_v5 }
 0x135   :  { %1628 = vrot.lane.b32.xlu0 %v4676_v61, %s4406_s25 }
 0x136   :  { %1774 = vrot.lane.b32.xlu1 %v4676_v61, %s4407_s28 }
 0x139   :  { %1626 = vrot.lane.b32.xlu0 %v4671_v44, %s4406_s25 }
 0x13a   :  { %1922 = vrot.lane.b32.xlu1 %v4674_v60, %s4408_s29 }
 0x13d   :  { %1772 = vrot.lane.b32.xlu0 %v4671_v44, %s4407_s28 }
 0x13e   :  { %2068 = vrot.lane.b32.xlu1 %v4674_v60, %s4409_s30 }
 0x141   :  { %1920 = vrot.lane.b32.xlu0 %v4676_v61, %s4408_s29 }
 0x142   :  { %2066 = vrot.lane.b32.xlu1 %v4676_v61, %s4409_s30 }
 0x145   :  { %1918 = vrot.lane.b32.xlu0 %v4671_v44, %s4408_s29 }
 0x146   :  { %2214 = vrot.lane.b32.xlu1 %v4674_v60, %s4410_s7 }
 0x149   :  { %2064 = vrot.lane.b32.xlu0 %v4671_v44, %s4409_s30 }
 0x14a   :  { %2360 = vrot.lane.b32.xlu1 %v4674_v60, %s4411_s8 }
 0x14d   :  { %2212 = vrot.lane.b32.xlu0 %v4676_v61, %s4410_s7 }
 0x14e   :  { %2358 = vrot.lane.b32.xlu1 %v4676_v61, %s4411_s8 }
 0x151   :  { %2210 = vrot.lane.b32.xlu0 %v4671_v44, %s4410_s7 }
 0x152   :  { %2506 = vrot.lane.b32.xlu1 %v4674_v60, %s4412_s9 }
 0x155   :  { %2356 = vrot.lane.b32.xlu0 %v4671_v44, %s4411_s8 }
 0x156   :  { %2652 = vrot.lane.b32.xlu1 %v4674_v60, %s4413_s0 }
 0x159   :  { %2504 = vrot.lane.b32.xlu0 %v4676_v61, %s4412_s9 }
 0x15a   :  { %2650 = vrot.lane.b32.xlu1 %v4676_v61, %s4413_s0 }
 0x15d   :  { %2502 = vrot.lane.b32.xlu0 %v4671_v44, %s4412_s9 }
 0x15e   :  { %2798 = vrot.lane.b32.xlu1 %v4674_v60, %s4414_s10 }
 0x161   :  { %2648 = vrot.lane.b32.xlu0 %v4671_v44, %s4413_s0 }
 0x162   :  { %2944 = vrot.lane.b32.xlu1 %v4674_v60, %s4415_s11 }
 0x165   :  { %2796 = vrot.lane.b32.xlu0 %v4676_v61, %s4414_s10 }
 0x166   :  { %2942 = vrot.lane.b32.xlu1 %v4676_v61, %s4415_s11  ;;  %v3436_v61 = vld [vmem:[%s5567_s2 + $0x188] sm:$0xff] }
 0x169   :  { %2794 = vrot.lane.b32.xlu0 %v4671_v44, %s4414_s10 }
 0x16d   :  { %2940 = vrot.lane.b32.xlu0 %v4671_v44, %s4415_s11  ;;  %v3407_v44 = vld [vmem:[%s5567_s2 + $0x120] sm:$0xff] }
 0x17f   :  { %v779_v6 = vpop.permute.xlu1 %778 }
 0x187   :  { %v783_v7 = vpop.permute.xlu0 %782 }
 0x188   :  { %v1047_v8 = vpop.permute.xlu1 %1046  ;;  %3856 = vmatpush3.msk.msra.mxu0 %vm808_vm1, %v783_v7 }
 0x189   :  { %3857 = vmatprep.subr.mxu0 %v4399_v5 }
 0x18b   :  { %v781_v9 = vpop.permute.xlu0 %780 }
 0x18c   :  { %v1193_v10 = vpop.permute.xlu1 %1192  ;;  %3858 = vmatpush3.msra.mxu0 %v781_v9  ;;  %v3397_v9 = vld [vmem:[%s5567_s2 + $0x110] sm:$0x3] }
 0x18d   :  { %3937 = vmatpush3.msk.msra.mxu1 %vm808_vm1, %v1193_v10  ;;  %3859 = vmatprep.subr.mxu0 %v4399_v5 }
 0x18e   :  { %3860 = vmatpush3.msra.mxu0 %v779_v6  ;;  %3938 = vmatprep.subr.mxu1 %v4399_v5  ;;  %v3396_v6 = vld [vmem:[%s5567_s2 + $0x108] sm:$0xff] }
 0x18f   :  { %v1045_v12 = vpop.permute.xlu0 %1044  ;;  %3862 = vmatmul.mubr.msk.f32.vlgmr.msra.gmra.mxu0 %vm786_vm2, %v3338_v11  ;;  %3909 = vmatprep.subr.mxu0 %v4399_v5 }
 0x190   :  { %v1191_v13 = vpop.permute.xlu1 %1190  ;;  %3910 = vmatpush3.msk.msra.mxu0 %vm808_vm1, %v1047_v8  ;;  %3864 = vmatprep.mubr.msk.f32.mxu0 %vm4400_vm0, %v4399_v5  ;;  %v3439_v8 = vld [vmem:[%s5567_s2 + $0x1a0] sm:$0xff] }
 0x191   :  { %3939 = vmatpush3.msra.mxu1 %v1191_v13  ;;  %3911 = vmatprep.subr.mxu0 %v4399_v5  ;;  %v3421_v13 = vld [vmem:[%s5567_s2 + $0x150] sm:$0xff] }
 0x192   :  { %3912 = vmatpush3.msra.mxu0 %v1045_v12  ;;  %3940 = vmatprep.subr.mxu1 %v4399_v5  ;;  %v3440_v12 = vld [vmem:[%s5567_s2 + $0x1a8] sm:$0xff] }
 0x193   :  { %v1043_v15 = vpop.permute.xlu0 %1042  ;;  %3865 = vmatmul.mubr.msk.f32.gmra.mxu0 %vm786_vm2, %v3339_v14  ;;  %3913 = vmatprep.subr.mxu0 %v4399_v5 }
 0x194   :  { %v1339_v16 = vpop.permute.xlu1 %1338  ;;  %3914 = vmatpush3.msra.mxu0 %v1043_v15  ;;  %3867 = vmatprep.mubr.msk.f32.mxu0 %vm4400_vm0, %v4399_v5 }
 0x195   :  { %3963 = vmatprep.subr.mxu0 %v4399_v5 }
 0x197   :  { %v1189_v19 = vpop.permute.xlu0 %1188  ;;  %3868 = vmatmul.mubr.msk.f32.gmra.mxu0 %vm786_vm2, %v3340_v17 }
 0x198   :  { %v1485_v20 = vpop.permute.xlu1 %1484  ;;  %3941 = vmatpush3.msra.mxu1 %v1189_v19  ;;  %3870 = vmatprep.mubr.msk.f32.mxu0 %vm4400_vm0, %v4399_v5 }
 0x199   :  { %3943 = vmatmul.mubr.msk.f32.vlgmr.msra.gmra.mxu1 %vm786_vm2, %v3376_v18  ;;  %3990 = vmatprep.subr.mxu1 %v4399_v5  ;;  %v3422_v18 = vld [vmem:[%s5567_s2 + $0x158] sm:$0xff] }
 0x19a   :  { %3991 = vmatpush3.msk.msra.mxu1 %vm808_vm1, %v1485_v20  ;;  %3945 = vmatprep.mubr.msk.f32.mxu1 %vm4400_vm0, %v4399_v5 }
 0x19b   :  { %v1337_v22 = vpop.permute.xlu0 %1336  ;;  %3871 = vmatmul.mubr.msk.f32.gmra.mxu0 %vm786_vm2, %v3341_v21  ;;  %3992 = vmatprep.subr.mxu1 %v4399_v5 }
 0x19c   :  { %v1483_v24 = vpop.permute.xlu1 %1482  ;;  %3873 = vmatprep.mubr.msk.f32.mxu0 %vm4400_vm0, %v4399_v5 }
 0x19d   :  { %3993 = vmatpush3.msra.mxu1 %v1483_v24 }
 0x19e   :  { %3946 = vmatmul.mubr.msk.f32.gmra.mxu1 %vm786_vm2, %v3377_v23  ;;  %3994 = vmatprep.subr.mxu1 %v4399_v5  ;;  %v3423_v23 = vld [vmem:[%s5567_s2 + $0x160] sm:$0xff] }
 0x19f   :  { %v1335_v26 = vpop.permute.xlu0 %1334  ;;  %3874 = vmatmul.mubr.msk.f32.gmra.mxu0 %vm786_vm2, %v3342_v25  ;;  %3948 = vmatprep.mubr.msk.f32.mxu1 %vm4400_vm0, %v4399_v5 }
 0x1a0   :  { %3876 = vmatprep.mubr.msk.f32.mxu0 %vm4400_vm0, %v4399_v5  ;;  %v1631_v35 = vpop.permute.xlu1 %1630 }
 0x1a2   :  { %3949 = vmatmul.mubr.msk.f32.gmra.mxu1 %vm786_vm2, %v3378_v27  ;;  %v3466_v27 = vld [vmem:[%s5567_s2 + $0x1f8] sm:$0xff] }
 0x1a3   :  { %v1481_v29 = vpop.permute.xlu0 %1480  ;;  %3877 = vmatmul.mubr.msk.f32.gmra.mxu0 %vm786_vm2, %v3343_v28  ;;  %3951 = vmatprep.mubr.msk.f32.mxu1 %vm4400_vm0, %v4399_v5 }
 0x1a4   :  { %3995 = vmatpush3.msra.mxu1 %v1481_v29  ;;  %3879 = vmatprep.mubr.msk.f32.mxu0 %vm4400_vm0, %v4399_v5  ;;  %v1777_v40 = vpop.permute.xlu1 %1776  ;;  %v3424_v29 = vld [vmem:[%s5567_s2 + $0x168] sm:$0xff] }
 0x1a5   :  { %4044 = vmatprep.subr.mxu1 %v4399_v5 }
 0x1a6   :  { %3952 = vmatmul.mubr.msk.f32.gmra.mxu1 %vm786_vm2, %v3379_v30 }
 0x1a7   :  { %3880 = vmatmul.mubr.msk.f32.gmra.mxu0 %vm786_vm2, %v3344_v31  ;;  %3954 = vmatprep.mubr.msk.f32.mxu1 %vm4400_vm0, %v4399_v5  ;;  %v1629_v37 = vpop.permute.xlu0 %1628 }
 0x1a8   :  { %3915 = vmatprep.mubr.msk.f32.mxu0 %vm4400_vm0, %v4399_v5  ;;  %v1775_v45 = vpop.permute.xlu1 %1774 }
 0x1aa   :  { %3955 = vmatmul.mubr.msk.f32.gmra.mxu1 %vm786_vm2, %v3380_v32  ;;  %v3467_v32 = vld [vmem:[%s5567_s2 + $0x200] sm:$0xff] }
 0x1ab   :  { %3916 = vmatmul.mubr.msk.f32.vlgmr.msra.gmra.mxu0 %vm786_vm2, %v3361_v33  ;;  %3957 = vmatprep.mubr.msk.f32.mxu1 %vm4400_vm0, %v4399_v5  ;;  %v1627_v42 = vpop.permute.xlu0 %1626 }
 0x1ac   :  { %3964 = vmatpush3.msk.msra.mxu0 %vm808_vm1, %v1339_v16  ;;  %3918 = vmatprep.mubr.msk.f32.mxu0 %vm4400_vm0, %v4399_v5  ;;  %v4958_v55 = vpop.permute.xlu1 %1922  ;;  %v3441_v16 = vld [vmem:[%s5567_s2 + $0x1b0] sm:$0xff] }
 0x1ad   :  { %3965 = vmatprep.subr.mxu0 %v4399_v5 }
 0x1ae   :  { %3958 = vmatmul.mubr.msk.f32.gmra.mxu1 %vm786_vm2, %v3381_v34  ;;  %3966 = vmatpush3.msra.mxu0 %v1337_v22  ;;  %v3442_v22 = vld [vmem:[%s5567_s2 + $0x1b8] sm:$0x3]  ;;  %v3425_v34 = vld [vmem:[%s5567_s2 + $0x170] sm:$0xff] }
 0x1af   :  { %3967 = vmatprep.subr.mxu0 %v4399_v5  ;;  %3919 = vmatmul.mubr.msk.f32.gmra.mxu0 %vm786_vm2, %v3362_v36  ;;  %v1773_v47 = vpop.permute.xlu0 %1772 }
 0x1b0   :  { %3968 = vmatpush3.msra.mxu0 %v1335_v26  ;;  %3960 = vmatprep.mubr.msk.f32.mxu1 %vm4400_vm0, %v4399_v5  ;;  %v2069_v60 = vpop.permute.xlu1 %2068 }
 0x1b1   :  { %3921 = vmatprep.mubr.msk.f32.mxu0 %vm4400_vm0, %v4399_v5  ;;  %4017 = vmatprep.subr.mxu0 %v4399_v5 }
 0x1b2   :  { %3961 = vmatmul.mubr.msk.f32.gmra.mxu1 %vm786_vm2, %v3382_v38  ;;  %v3468_v38 = vld [vmem:[%s5567_s2 + $0x208] sm:$0xff] }
 0x1b3   :  { %3922 = vmatmul.mubr.msk.f32.gmra.mxu0 %vm786_vm2, %v3363_v39  ;;  %3996 = vmatprep.mubr.msk.f32.mxu1 %vm4400_vm0, %v4399_v5  ;;  %v4967_v57 = vpop.permute.xlu0 %1920  ;;  %v3426_v39 = vld [vmem:[%s5567_s2 + $0x178] sm:$0xff] }
 0x1b4   :  { %3924 = vmatprep.mubr.msk.f32.mxu0 %vm4400_vm0, %v4399_v5  ;;  %v2067_v1 = vpop.permute.xlu1 %2066 }
 0x1b6   :  { %3997 = vmatmul.mubr.msk.f32.vlgmr.msra.gmra.mxu1 %vm786_vm2, %v3406_v41  ;;  %v3469_v41 = vld [vmem:[%s5567_s2 + $0x210] sm:$0xff] }
 0x1b7   :  { %4045 = vmatpush3.msk.msra.mxu1 %vm808_vm1, %v1777_v40  ;;  %3925 = vmatmul.mubr.msk.f32.gmra.mxu0 %vm786_vm2, %v3364_v43  ;;  %v1919_v62 = vpop.permute.xlu0 %1918  ;;  %v3470_v43 = vld [vmem:[%s5567_s2 + $0x218] sm:$0xff] }
 0x1b8   :  { %4046 = vmatprep.subr.mxu1 %v4399_v5  ;;  %3999 = vmatprep.mubr.msk.f32.mxu1 %vm4400_vm0, %v4399_v5  ;;  %v5060_v17 = vpop.permute.xlu1 %2214 }
 0x1b9   :  { %4047 = vmatpush3.msra.mxu1 %v1775_v45  ;;  %3927 = vmatprep.mubr.msk.f32.mxu0 %vm4400_vm0, %v4399_v5  ;;  %v3471_v45 = vld [vmem:[%s5567_s2 + $0x220] sm:$0xff] }
 0x1ba   :  { %4048 = vmatprep.subr.mxu1 %v4399_v5  ;;  %4000 = vmatmul.mubr.msk.f32.gmra.mxu1 %vm786_vm2, %v3407_v44  ;;  %v3451_v44 = vld [vmem:[%s5567_s2 + $0x1c0] sm:$0xff] }
 0x1bb   :  { %4049 = vmatpush3.msra.mxu1 %v1773_v47  ;;  %3928 = vmatmul.mubr.msk.f32.gmra.mxu0 %vm786_vm2, %v3365_v46  ;;  %v2065_v3 = vpop.permute.xlu0 %2064  ;;  %v3452_v47 = vld [vmem:[%s5567_s2 + $0x1c8] sm:$0xff] }
 0x1bc   :  { %4002 = vmatprep.mubr.msk.f32.mxu1 %vm4400_vm0, %v4399_v5  ;;  %3930 = vmatprep.mubr.msk.f32.mxu0 %vm4400_vm0, %v4399_v5  ;;  %v2361_v25 = vpop.permute.xlu1 %2360 }
 0x1bd   :  { %4098 = vmatprep.subr.mxu1 %v4399_v5 }
 0x1be   :  { %4003 = vmatmul.mubr.msk.f32.gmra.mxu1 %vm786_vm2, %v3408_v48 }
 0x1bf   :  { %3931 = vmatmul.mubr.msk.f32.gmra.mxu0 %vm786_vm2, %v3366_v49  ;;  %4005 = vmatprep.mubr.msk.f32.mxu1 %vm4400_vm0, %v4399_v5  ;;  %v5070_v20 = vpop.permute.xlu0 %2212  ;;  %v3472_v49 = vld [vmem:[%s5567_s2 + $0x228] sm:$0x3] }
 0x1c0   :  { %3933 = vmatprep.mubr.msk.f32.mxu0 %vm4400_vm0, %v4399_v5  ;;  %v2359_v33 = vpop.permute.xlu1 %2358 }
 0x1c2   :  { %4006 = vmatmul.mubr.msk.f32.gmra.mxu1 %vm786_vm2, %v3409_v50  ;;  %v3453_v50 = vld [vmem:[%s5567_s2 + $0x1d0] sm:$0xff] }
 0x1c3   :  { %3934 = vmatmul.mubr.msk.f32.gmra.mxu0 %vm786_vm2, %v3367_v51  ;;  %4008 = vmatprep.mubr.msk.f32.mxu1 %vm4400_vm0, %v4399_v5  ;;  %v2211_v28 = vpop.permute.xlu0 %2210 }
 0x1c4   :  { %3969 = vmatprep.mubr.msk.f32.mxu0 %vm4400_vm0, %v4399_v5  ;;  %v5166_v46 = vpop.permute.xlu1 %2506 }
 0x1c6   :  { %4009 = vmatmul.mubr.msk.f32.gmra.mxu1 %vm786_vm2, %v3410_v52  ;;  %v3496_v52 = vld [vmem:[%s5567_s2 + $0x268] sm:$0xff] }
 0x1c7   :  { %3970 = vmatmul.mubr.msk.f32.vlgmr.msra.gmra.mxu0 %vm786_vm2, %v3391_v53  ;;  %4011 = vmatprep.mubr.msk.f32.mxu1 %vm4400_vm0, %v4399_v5  ;;  %v2357_v36 = vpop.permute.xlu0 %2356 }
 0x1c8   :  { %4018 = vmatpush3.msk.msra.mxu0 %vm808_vm1, %v1631_v35  ;;  %3972 = vmatprep.mubr.msk.f32.mxu0 %vm4400_vm0, %v4399_v5  ;;  %v2653_v51 = vpop.permute.xlu1 %2652 }
 0x1c9   :  { %4019 = vmatprep.subr.mxu0 %v4399_v5 }
 0x1ca   :  { %4012 = vmatmul.mubr.msk.f32.gmra.mxu1 %vm786_vm2, %v3411_v54  ;;  %4020 = vmatpush3.msra.mxu0 %v1629_v37  ;;  %v3454_v54 = vld [vmem:[%s5567_s2 + $0x1d8] sm:$0xff] }
 0x1cb   :  { %4021 = vmatprep.subr.mxu0 %v4399_v5  ;;  %3973 = vmatmul.mubr.msk.f32.gmra.mxu0 %vm786_vm2, %v3392_v56  ;;  %v5176_v48 = vpop.permute.xlu0 %2504 }
 0x1cc   :  { %4022 = vmatpush3.msra.mxu0 %v1627_v42  ;;  %4014 = vmatprep.mubr.msk.f32.mxu1 %vm4400_vm0, %v4399_v5  ;;  %v3427_v42 = vld [vmem:[%s5567_s2 + $0x180] sm:$0x3]  ;;  %v2651_v56 = vpop.permute.xlu1 %2650 }
 0x1cd   :  { %3975 = vmatprep.mubr.msk.f32.mxu0 %vm4400_vm0, %v4399_v5  ;;  %4071 = vmatprep.subr.mxu0 %v4399_v5 }
 0x1ce   :  { %4015 = vmatmul.mubr.msk.f32.gmra.mxu1 %vm786_vm2, %v3412_v58 }
 0x1cf   :  { %3976 = vmatmul.mubr.msk.f32.gmra.mxu0 %vm786_vm2, %v3393_v59  ;;  %4050 = vmatprep.mubr.msk.f32.mxu1 %vm4400_vm0, %v4399_v5  ;;  %v2503_v53 = vpop.permute.xlu0 %2502  ;;  %v3498_v59 = vld [vmem:[%s5567_s2 + $0x278] sm:$0xff] }
 0x1d0   :  { %3978 = vmatprep.mubr.msk.f32.mxu0 %vm4400_vm0, %v4399_v5 }
 0x1d2   :  { %4051 = vmatmul.mubr.msk.f32.vlgmr.msra.gmra.mxu1 %vm786_vm2, %v3436_v61  ;;  %v3499_v61 = vld [vmem:[%s5567_s2 + $0x280] sm:$0xff] }
 0x1d3   :  { %4099 = vmatpush3.msk.msra.mxu1 %vm808_vm1, %v2069_v60  ;;  %3979 = vmatmul.mubr.msk.f32.gmra.mxu0 %vm786_vm2, %v3394_v63  ;;  %v2649_v58 = vpop.permute.xlu0 %2648  ;;  %v3456_v60 = vld [vmem:[%s5567_s2 + $0x1e8] sm:$0xff]  ;;  %v4416_v63 = vmov 0  }
 0x1d4   :  { %4100 = vmatprep.subr.mxu1 %v4399_v5  ;;  %4053 = vmatprep.mubr.msk.f32.mxu1 %vm4400_vm0, %v4399_v5 }
 0x1d5   :  { %4101 = vmatpush3.msra.mxu1 %v2067_v1  ;;  %3981 = vmatprep.mubr.msk.f32.mxu0 %vm4400_vm0, %v4399_v5  ;;  %v3084_v1 = vld [vmem:[%s5568_s3 + $0x30] sm:$0x3] }
 0x1d6   :  { %4102 = vmatprep.subr.mxu1 %v4399_v5  ;;  %4054 = vmatmul.mubr.msk.f32.gmra.mxu1 %vm786_vm2, %v3437_v0  ;;  %v3083_v0 = vld [vmem:[%s5568_s3 + $0x28] sm:$0xff] }
 0x1d7   :  { %4103 = vmatpush3.msra.mxu1 %v2065_v3  ;;  %3982 = vmatmul.mubr.msk.f32.gmra.mxu0 %vm786_vm2, %v3395_v2  ;;  %v3500_v2 = vld [vmem:[%s5567_s2 + $0x288] sm:$0xff]  ;;  %v3481_v3 = vld [vmem:[%s5567_s2 + $0x230] sm:$0xff] }
 0x1d8   :  { %4056 = vmatprep.mubr.msk.f32.mxu1 %vm4400_vm0, %v4399_v5  ;;  %3984 = vmatprep.mubr.msk.f32.mxu0 %vm4400_vm0, %v4399_v5 }
 0x1d9   :  { %4152 = vmatprep.subr.mxu1 %v4399_v5  ;;  %4323 = vset.pattern.permute.xlu0 %v4416_v63 }
 0x1da   :  { %4057 = vmatmul.mubr.msk.f32.gmra.mxu1 %vm786_vm2, %v3438_v4  ;;  %v5024_v7 = vpop.f32.mrf.mxu1  ;;  %4322 = vset.pattern.permute.xlu1 %v4416_v63  ;;  %v3080_v4 = vld [vmem:[%s5568_s3 + $0x10] sm:$0xff] }
 0x1db   :  { %3985 = vmatmul.mubr.msk.f32.gmra.mxu0 %vm786_vm2, %v3396_v6  ;;  %4059 = vmatprep.mubr.msk.f32.mxu1 %vm4400_vm0, %v4399_v5  ;;  %v3082_v6 = vld [vmem:[%s5568_s3 + $0x20] sm:$0xff] }
 0x1dc   :  { %3987 = vmatprep.mubr.msk.f32.mxu0 %vm4400_vm0, %v4399_v5  ;;  %v3890_v10 = vpop.f32.mrf.mxu1  ;;  %3112 = vperm.xlu0 %4323, %v3083_v0  }
 0x1dd   :  { %3117 = vperm.xlu1 %4322, %v3084_v1   ;;  %v3482_v10 = vld [vmem:[%s5567_s2 + $0x238] sm:$0xff] }
 0x1de   :  { %4060 = vmatmul.mubr.msk.f32.gmra.mxu1 %vm786_vm2, %v3439_v8  ;;  %v5038_v11 = vpop.f32.mrf.mxu1  ;;  %v3501_v8 = vld [vmem:[%s5567_s2 + $0x290] sm:$0xff] }
 0x1df   :  { %3988 = vmatmul.mubr.msk.f32.gmra.mxu0 %vm786_vm2, %v3397_v9  ;;  %4062 = vmatprep.mubr.msk.f32.mxu1 %vm4400_vm0, %v4399_v5  ;;  %v5276_v9 = vpop.permute.xlu1 %2798 }
 0x1e0   :  { %4023 = vmatprep.mubr.msk.f32.mxu0 %vm4400_vm0, %v4399_v5  ;;  %v3893_v14 = vpop.f32.mrf.mxu1  ;;  %3097 = vperm.xlu0 %4323, %v3080_v4  }
 0x1e1   :  { %3107 = vperm.xlu1 %4322, %v3082_v6   ;;  %v3078_v14 = vld [vmem:[%s5568_s3] sm:$0xff] }
 0x1e2   :  { %4063 = vmatmul.mubr.msk.f32.gmra.mxu1 %vm786_vm2, %v3440_v12  ;;  %v5052_v15 = vpop.f32.mrf.mxu1  ;;  %v5286_v12 = vpop.permute.xlu0 %2796 }
 0x1e3   :  { %4024 = vmatmul.mubr.msk.f32.vlgmr.msra.gmra.mxu0 %vm786_vm2, %v3421_v13  ;;  %4065 = vmatprep.mubr.msk.f32.mxu1 %vm4400_vm0, %v4399_v5  ;;  %v3502_v13 = vld [vmem:[%s5567_s2 + $0x298] sm:$0x3] }
 0x1e4   :  { %4072 = vmatpush3.msk.msra.mxu0 %vm808_vm1, %v4958_v55  ;;  %4026 = vmatprep.mubr.msk.f32.mxu0 %vm4400_vm0, %v4399_v5  ;;  %v3896_v19 = vpop.f32.mrf.mxu1  ;;  %v3497_v55 = vld [vmem:[%s5567_s2 + $0x270] sm:$0xff] }
 0x1e5   :  { %4073 = vmatprep.subr.mxu0 %v4399_v5  ;;  %3087 = vperm.xlu0 %4323, %v3078_v14   ;;  %v3526_v19 = vld [vmem:[%s5567_s2 + $0x2d8] sm:$0xff] }
 0x1e6   :  { %4066 = vmatmul.mubr.msk.f32.gmra.mxu1 %vm786_vm2, %v3441_v16  ;;  %4074 = vmatpush3.msra.mxu0 %v4967_v57  ;;  %v5074_v21 = vpop.f32.mrf.mxu1  ;;  %v3455_v57 = vld [vmem:[%s5567_s2 + $0x1e0] sm:$0xff]  ;;  %v3546_v14 = vld [vmem:[%s5567_s2 + $0x338] sm:$0xff] }
 0x1e7   :  { %4075 = vmatprep.subr.mxu0 %v4399_v5  ;;  %4027 = vmatmul.mubr.msk.f32.gmra.mxu0 %vm786_vm2, %v3422_v18  ;;  %v3483_v16 = vld [vmem:[%s5567_s2 + $0x240] sm:$0xff]  ;;  %v2945_v18 = vpop.permute.xlu1 %2944 }
 0x1e8   :  { %4076 = vmatpush3.msra.mxu0 %v1919_v62  ;;  %4068 = vmatprep.mubr.msk.f32.mxu1 %vm4400_vm0, %v4399_v5  ;;  %v3899_v24 = vpop.f32.mrf.mxu1  ;;  %v3457_v62 = vld [vmem:[%s5567_s2 + $0x1f0] sm:$0x3] }
 0x1e9   :  { %4029 = vmatprep.mubr.msk.f32.mxu0 %vm4400_vm0, %v4399_v5  ;;  %4125 = vmatprep.subr.mxu0 %v4399_v5 }
 0x1ea   :  { %4069 = vmatmul.mubr.msk.f32.gmra.mxu1 %vm786_vm2, %v3442_v22  ;;  %v5090_v26 = vpop.f32.mrf.mxu1  ;;  %v3484_v22 = vld [vmem:[%s5567_s2 + $0x248] sm:$0xff] }
 0x1eb   :  { %4030 = vmatmul.mubr.msk.f32.gmra.mxu0 %vm786_vm2, %v3423_v23  ;;  %4104 = vmatprep.mubr.msk.f32.mxu1 %vm4400_vm0, %v4399_v5  ;;  %v3527_v23 = vld [vmem:[%s5567_s2 + $0x2e0] sm:$0xff]  ;;  %v2943_v24 = vpop.permute.xlu1 %2942 }
 0x1ec   :  { %4032 = vmatprep.mubr.msk.f32.mxu0 %vm4400_vm0, %v4399_v5  ;;  %v3902_v30 = vpop.f32.mrf.mxu1 }
 0x1ed   :  { %v3486_v30 = vld [vmem:[%s5567_s2 + $0x258] sm:$0xff] }
 0x1ee   :  { %4105 = vmatmul.mubr.msk.f32.vlgmr.msra.gmra.mxu1 %vm786_vm2, %v3466_v27  ;;  %v5104_v31 = vpop.f32.mrf.mxu1 }
 0x1ef   :  { %4153 = vmatpush3.msk.msra.mxu1 %vm808_vm1, %v2361_v25  ;;  %4033 = vmatmul.mubr.msk.f32.gmra.mxu0 %vm786_vm2, %v3424_v29  ;;  %v3485_v25 = vld [vmem:[%s5567_s2 + $0x250] sm:$0xff]  ;;  %v3528_v29 = vld [vmem:[%s5567_s2 + $0x2e8] sm:$0xff] }
 0x1f0   :  { %4154 = vmatprep.subr.mxu1 %v4399_v5  ;;  %4107 = vmatprep.mubr.msk.f32.mxu1 %vm4400_vm0, %v4399_v5  ;;  %v3905_v35 = vpop.f32.mrf.mxu1 }
 0x1f1   :  { %4155 = vmatpush3.msra.mxu1 %v2359_v33  ;;  %4035 = vmatprep.mubr.msk.f32.mxu0 %vm4400_vm0, %v4399_v5  ;;  %v3487_v33 = vld [vmem:[%s5567_s2 + $0x260] sm:$0x3] }
 0x1f2   :  { %4156 = vmatprep.subr.mxu1 %v4399_v5  ;;  %4108 = vmatmul.mubr.msk.f32.gmra.mxu1 %vm786_vm2, %v3467_v32  ;;  %v5121_v37 = vpop.f32.mrf.mxu1  ;;  %v3529_v32 = vld [vmem:[%s5567_s2 + $0x2f0] sm:$0xff]  ;;  %v3136_v35 = vld [vmem:[%s5569_s5] sm:$0xff] }
 0x1f3   :  { %4157 = vmatpush3.msra.mxu1 %v2357_v36  ;;  %4036 = vmatmul.mubr.msk.f32.gmra.mxu0 %vm786_vm2, %v3425_v34  ;;  %v3530_v34 = vld [vmem:[%s5567_s2 + $0x2f8] sm:$0xff]  ;;  %v3511_v36 = vld [vmem:[%s5567_s2 + $0x2a0] sm:$0xff] }
 0x1f4   :  { %4110 = vmatprep.mubr.msk.f32.mxu1 %vm4400_vm0, %v4399_v5  ;;  %4038 = vmatprep.mubr.msk.f32.mxu0 %vm4400_vm0, %v4399_v5  ;;  %v3908_v40 = vpop.f32.mrf.mxu1 }
 0x1f5   :  { %4206 = vmatprep.subr.mxu1 %v4399_v5  ;;  %v3512_v40 = vld [vmem:[%s5567_s2 + $0x2a8] sm:$0xff] }
 0x1f6   :  { %4111 = vmatmul.mubr.msk.f32.gmra.mxu1 %vm786_vm2, %v3468_v38  ;;  %v3531_v38 = vld [vmem:[%s5567_s2 + $0x300] sm:$0xff] }
 0x1f7   :  { %4039 = vmatmul.mubr.msk.f32.gmra.mxu0 %vm786_vm2, %v3426_v39  ;;  %4113 = vmatprep.mubr.msk.f32.mxu1 %vm4400_vm0, %v4399_v5  ;;  %v3137_v39 = vld [vmem:[%s5569_s5 + $0x8] sm:$0x3] }
 0x1f8   :  { %4041 = vmatprep.mubr.msk.f32.mxu0 %vm4400_vm0, %v4399_v5  ;;  %3145 = vperm.xlu0 %4323, %v3137_v39  }
 0x1fa   :  { %4114 = vmatmul.mubr.msk.f32.gmra.mxu1 %vm786_vm2, %v3469_v41  ;;  %v3532_v41 = vld [vmem:[%s5567_s2 + $0x308] sm:$0x3] }
 0x1fb   :  { %4042 = vmatmul.mubr.msk.f32.gmra.mxu0 %vm786_vm2, %v3427_v42  ;;  %4116 = vmatprep.mubr.msk.f32.mxu1 %vm4400_vm0, %v4399_v5  ;;  %v3513_v42 = vld [vmem:[%s5567_s2 + $0x2b0] sm:$0xff] }
 0x1fc   :  { %4077 = vmatprep.mubr.msk.f32.mxu0 %vm4400_vm0, %v4399_v5 }
 0x1fe   :  { %4117 = vmatmul.mubr.msk.f32.gmra.mxu1 %vm786_vm2, %v3470_v43  ;;  %v3556_v43 = vld [vmem:[%s5567_s2 + $0x348] sm:$0xff] }
 0x1ff   :  { %4078 = vmatmul.mubr.msk.f32.vlgmr.msra.gmra.mxu0 %vm786_vm2, %v3451_v44  ;;  %4119 = vmatprep.mubr.msk.f32.mxu1 %vm4400_vm0, %v4399_v5  ;;  %v3514_v44 = vld [vmem:[%s5567_s2 + $0x2b8] sm:$0xff] }
 0x200   :  { %4126 = vmatpush3.msk.msra.mxu0 %vm808_vm1, %v5060_v17  ;;  %4080 = vmatprep.mubr.msk.f32.mxu0 %vm4400_vm0, %v4399_v5  ;;  %v3081_v17 = vld [vmem:[%s5568_s3 + $0x18] sm:$0xff] }
 0x201   :  { %4127 = vmatprep.subr.mxu0 %v4399_v5  ;;  %3102 = vperm.xlu1 %4322, %v3081_v17  }
 0x202   :  { %4120 = vmatmul.mubr.msk.f32.gmra.mxu1 %vm786_vm2, %v3471_v45  ;;  %4128 = vmatpush3.msra.mxu0 %v5070_v20  ;;  %v2795_v20 = vpop.permute.xlu0 %2794  ;;  %v3557_v45 = vld [vmem:[%s5567_s2 + $0x350] sm:$0xff] }
 0x203   :  { %4129 = vmatprep.subr.mxu0 %v4399_v5  ;;  %4081 = vmatmul.mubr.msk.f32.gmra.mxu0 %vm786_vm2, %v3452_v47  ;;  %v3558_v47 = vld [vmem:[%s5567_s2 + $0x358] sm:$0xff] }
 0x204   :  { %4130 = vmatpush3.msra.mxu0 %v2211_v28  ;;  %4122 = vmatprep.mubr.msk.f32.mxu1 %vm4400_vm0, %v4399_v5  ;;  %v3079_v28 = vld [vmem:[%s5568_s3 + $0x8] sm:$0xff] }
 0x205   :  { %4083 = vmatprep.mubr.msk.f32.mxu0 %vm4400_vm0, %v4399_v5  ;;  %4179 = vmatprep.subr.mxu0 %v4399_v5 }
 0x206   :  { %4123 = vmatmul.mubr.msk.f32.gmra.mxu1 %vm786_vm2, %v3472_v49  ;;  %v2941_v27 = vpop.permute.xlu0 %2940  ;;  %3092 = vperm.xlu1 %4322, %v3079_v28   ;;  %v3559_v49 = vld [vmem:[%s5567_s2 + $0x360] sm:$0xff] }
 0x207   :  { %4084 = vmatmul.mubr.msk.f32.gmra.mxu0 %vm786_vm2, %v3453_v50  ;;  %4158 = vmatprep.mubr.msk.f32.mxu1 %vm4400_vm0, %v4399_v5  ;;  %v3517_v50 = vld [vmem:[%s5567_s2 + $0x2d0] sm:$0x3] }
 0x208   :  { %4086 = vmatprep.mubr.msk.f32.mxu0 %vm4400_vm0, %v4399_v5 }
 0x20a   :  { %4159 = vmatmul.mubr.msk.f32.vlgmr.msra.gmra.mxu1 %vm786_vm2, %v3496_v52  ;;  %3140 = vperm.xlu1 %4322, %v3136_v35   ;;  %v3560_v52 = vld [vmem:[%s5567_s2 + $0x368] sm:$0xff] }
 0x20b   :  { %4207 = vmatpush3.msk.msra.mxu1 %vm808_vm1, %v2653_v51  ;;  %4087 = vmatmul.mubr.msk.f32.gmra.mxu0 %vm786_vm2, %v3454_v54 }
 0x20c   :  { %4208 = vmatprep.subr.mxu1 %v4399_v5  ;;  %4161 = vmatprep.mubr.msk.f32.mxu1 %vm4400_vm0, %v4399_v5 }
 0x20d   :  { %4209 = vmatpush3.msra.mxu1 %v2651_v56  ;;  %4089 = vmatprep.mubr.msk.f32.mxu0 %vm4400_vm0, %v4399_v5  ;;  %v3561_v56 = vld [vmem:[%s5567_s2 + $0x370] sm:$0xff] }
 0x20e   :  { %4210 = vmatprep.subr.mxu1 %v4399_v5  ;;  %4162 = vmatmul.mubr.msk.f32.gmra.mxu1 %vm786_vm2, %v3497_v55 }
 0x20f   :  { %4211 = vmatpush3.msra.mxu1 %v2649_v58  ;;  %4090 = vmatmul.mubr.msk.f32.gmra.mxu0 %vm786_vm2, %v3455_v57  ;;  %v3542_v57 = vld [vmem:[%s5567_s2 + $0x318] sm:$0xff] }
 0x210   :  { %4164 = vmatprep.mubr.msk.f32.mxu1 %vm4400_vm0, %v4399_v5  ;;  %4092 = vmatprep.mubr.msk.f32.mxu0 %vm4400_vm0, %v4399_v5 }
 0x211   :  { %4260 = vmatprep.subr.mxu1 %v4399_v5 }
 0x212   :  { %4165 = vmatmul.mubr.msk.f32.gmra.mxu1 %vm786_vm2, %v3498_v59 }
 0x213   :  { %4093 = vmatmul.mubr.msk.f32.gmra.mxu0 %vm786_vm2, %v3456_v60  ;;  %4167 = vmatprep.mubr.msk.f32.mxu1 %vm4400_vm0, %v4399_v5  ;;  %v3562_v60 = vld [vmem:[%s5567_s2 + $0x378] sm:$0x3] }
 0x214   :  { %4095 = vmatprep.mubr.msk.f32.mxu0 %vm4400_vm0, %v4399_v5 }
 0x216   :  { %4168 = vmatmul.mubr.msk.f32.gmra.mxu1 %vm786_vm2, %v3499_v61  ;;  %v3543_v61 = vld [vmem:[%s5567_s2 + $0x320] sm:$0xff] }
 0x217   :  { %4096 = vmatmul.mubr.msk.f32.gmra.mxu0 %vm786_vm2, %v3457_v62  ;;  %4170 = vmatprep.mubr.msk.f32.mxu1 %vm4400_vm0, %v4399_v5 }
 0x218   :  { %4131 = vmatprep.mubr.msk.f32.mxu0 %vm4400_vm0, %v4399_v5 }
 0x21a   :  { %4171 = vmatmul.mubr.msk.f32.gmra.mxu1 %vm786_vm2, %v3500_v2  ;;  %v3544_v2 = vld [vmem:[%s5567_s2 + $0x328] sm:$0xff] }
 0x21b   :  { %4132 = vmatmul.mubr.msk.f32.vlgmr.msra.gmra.mxu0 %vm786_vm2, %v3481_v3  ;;  %4173 = vmatprep.mubr.msk.f32.mxu1 %vm4400_vm0, %v4399_v5 }
 0x21c   :  { %4180 = vmatpush3.msk.msra.mxu0 %vm808_vm1, %v5166_v46  ;;  %4134 = vmatprep.mubr.msk.f32.mxu0 %vm4400_vm0, %v4399_v5  ;;  %v3515_v46 = vld [vmem:[%s5567_s2 + $0x2c0] sm:$0xff] }
 0x21d   :  { %4181 = vmatprep.subr.mxu0 %v4399_v5 }
 0x21e   :  { %4174 = vmatmul.mubr.msk.f32.gmra.mxu1 %vm786_vm2, %v3501_v8  ;;  %4182 = vmatpush3.msra.mxu0 %v5176_v48  ;;  %v3516_v48 = vld [vmem:[%s5567_s2 + $0x2c8] sm:$0xff]  ;;  %v3545_v8 = vld [vmem:[%s5567_s2 + $0x330] sm:$0xff] }
 0x21f   :  { %4183 = vmatprep.subr.mxu0 %v4399_v5  ;;  %4135 = vmatmul.mubr.msk.f32.gmra.mxu0 %vm786_vm2, %v3482_v10 }
 0x220   :  { %4184 = vmatpush3.msra.mxu0 %v2503_v53  ;;  %4176 = vmatprep.mubr.msk.f32.mxu1 %vm4400_vm0, %v4399_v5  ;;  %v3541_v53 = vld [vmem:[%s5567_s2 + $0x310] sm:$0xff] }
 0x221   :  { %4137 = vmatprep.mubr.msk.f32.mxu0 %vm4400_vm0, %v4399_v5  ;;  %4233 = vmatprep.subr.mxu0 %v4399_v5 }
 0x222   :  { %4177 = vmatmul.mubr.msk.f32.gmra.mxu1 %vm786_vm2, %v3502_v13 }
 0x223   :  { %4138 = vmatmul.mubr.msk.f32.gmra.mxu0 %vm786_vm2, %v3483_v16  ;;  %4212 = vmatprep.mubr.msk.f32.mxu1 %vm4400_vm0, %v4399_v5 }
 0x224   :  { %4140 = vmatprep.mubr.msk.f32.mxu0 %vm4400_vm0, %v4399_v5 }
 0x226   :  { %4213 = vmatmul.mubr.msk.f32.vlgmr.msra.gmra.mxu1 %vm786_vm2, %v3526_v19 }
 0x227   :  { %4261 = vmatpush3.msk.msra.mxu1 %vm808_vm1, %v2945_v18  ;;  %4141 = vmatmul.mubr.msk.f32.gmra.mxu0 %vm786_vm2, %v3484_v22 }
 0x228   :  { %4262 = vmatprep.subr.mxu1 %v4399_v5  ;;  %4143 = vmatprep.mubr.msk.f32.mxu0 %vm4400_vm0, %v4399_v5 }
 0x229   :  { %4263 = vmatpush3.msra.mxu1 %v2943_v24  ;;  %4215 = vmatprep.mubr.msk.f32.mxu1 %vm4400_vm0, %v4399_v5 }
 0x22a   :  { %4264 = vmatprep.subr.mxu1 %v4399_v5  ;;  %4216 = vmatmul.mubr.msk.f32.gmra.mxu1 %vm786_vm2, %v3527_v23 }
 0x22b   :  { %4265 = vmatpush3.msra.mxu1 %v2941_v27  ;;  %4144 = vmatmul.mubr.msk.f32.gmra.mxu0 %vm786_vm2, %v3485_v25 }
 0x22c   :  { %4146 = vmatprep.mubr.msk.f32.mxu0 %vm4400_vm0, %v4399_v5  ;;  %4218 = vmatprep.mubr.msk.f32.mxu1 %vm4400_vm0, %v4399_v5 }
 0x22e   :  { %4219 = vmatmul.mubr.msk.f32.gmra.mxu1 %vm786_vm2, %v3528_v29 }
 0x22f   :  { %4147 = vmatmul.mubr.msk.f32.gmra.mxu0 %vm786_vm2, %v3486_v30  ;;  %4221 = vmatprep.mubr.msk.f32.mxu1 %vm4400_vm0, %v4399_v5 }
 0x230   :  { %4149 = vmatprep.mubr.msk.f32.mxu0 %vm4400_vm0, %v4399_v5 }
 0x232   :  { %4222 = vmatmul.mubr.msk.f32.gmra.mxu1 %vm786_vm2, %v3529_v32 }
 0x233   :  { %4150 = vmatmul.mubr.msk.f32.gmra.mxu0 %vm786_vm2, %v3487_v33  ;;  %4224 = vmatprep.mubr.msk.f32.mxu1 %vm4400_vm0, %v4399_v5 }
 0x234   :  { %4185 = vmatprep.mubr.msk.f32.mxu0 %vm4400_vm0, %v4399_v5 }
 0x236   :  { %4225 = vmatmul.mubr.msk.f32.gmra.mxu1 %vm786_vm2, %v3530_v34 }
 0x237   :  { %4186 = vmatmul.mubr.msk.f32.vlgmr.msra.gmra.mxu0 %vm786_vm2, %v3511_v36  ;;  %4227 = vmatprep.mubr.msk.f32.mxu1 %vm4400_vm0, %v4399_v5 }
 0x238   :  { %4234 = vmatpush3.msk.msra.mxu0 %vm808_vm1, %v5276_v9  ;;  %4188 = vmatprep.mubr.msk.f32.mxu0 %vm4400_vm0, %v4399_v5 }
 0x239   :  { %4235 = vmatprep.subr.mxu0 %v4399_v5 }
 0x23a   :  { %4236 = vmatpush3.msra.mxu0 %v5286_v12  ;;  %4228 = vmatmul.mubr.msk.f32.gmra.mxu1 %vm786_vm2, %v3531_v38 }
 0x23b   :  { %4237 = vmatprep.subr.mxu0 %v4399_v5  ;;  %4189 = vmatmul.mubr.msk.f32.gmra.mxu0 %vm786_vm2, %v3512_v40 }
 0x23c   :  { %4238 = vmatpush3.msra.mxu0 %v2795_v20  ;;  %4191 = vmatprep.mubr.msk.f32.mxu0 %vm4400_vm0, %v4399_v5  ;;  %v3547_v20 = vld [vmem:[%s5567_s2 + $0x340] sm:$0x3] }
 0x23d   :  { %4230 = vmatprep.mubr.msk.f32.mxu1 %vm4400_vm0, %v4399_v5 }
 0x23e   :  { %4231 = vmatmul.mubr.msk.f32.gmra.mxu1 %vm786_vm2, %v3532_v41 }
 0x23f   :  { %4192 = vmatmul.mubr.msk.f32.gmra.mxu0 %vm786_vm2, %v3513_v42  ;;  %4266 = vmatprep.mubr.msk.f32.mxu1 %vm4400_vm0, %v4399_v5 }
 0x240   :  { %4194 = vmatprep.mubr.msk.f32.mxu0 %vm4400_vm0, %v4399_v5 }
 0x242   :  { %4267 = vmatmul.mubr.msk.f32.vlgmr.msra.gmra.mxu1 %vm786_vm2, %v3556_v43 }
 0x243   :  { %4195 = vmatmul.mubr.msk.f32.gmra.mxu0 %vm786_vm2, %v3514_v44  ;;  %4269 = vmatprep.mubr.msk.f32.mxu1 %vm4400_vm0, %v4399_v5 }
 0x244   :  { %4197 = vmatprep.mubr.msk.f32.mxu0 %vm4400_vm0, %v4399_v5 }
 0x246   :  { %4270 = vmatmul.mubr.msk.f32.gmra.mxu1 %vm786_vm2, %v3557_v45 }
 0x247   :  { %4198 = vmatmul.mubr.msk.f32.gmra.mxu0 %vm786_vm2, %v3515_v46  ;;  %4272 = vmatprep.mubr.msk.f32.mxu1 %vm4400_vm0, %v4399_v5 }
 0x248   :  { %4200 = vmatprep.mubr.msk.f32.mxu0 %vm4400_vm0, %v4399_v5 }
 0x24a   :  { %4273 = vmatmul.mubr.msk.f32.gmra.mxu1 %vm786_vm2, %v3558_v47 }
 0x24b   :  { %4201 = vmatmul.mubr.msk.f32.gmra.mxu0 %vm786_vm2, %v3516_v48  ;;  %4275 = vmatprep.mubr.msk.f32.mxu1 %vm4400_vm0, %v4399_v5 }
 0x24c   :  { %4203 = vmatprep.mubr.msk.f32.mxu0 %vm4400_vm0, %v4399_v5 }
 0x24e   :  { %4276 = vmatmul.mubr.msk.f32.gmra.mxu1 %vm786_vm2, %v3559_v49 }
 0x24f   :  { %v877_v51 = vpop.f32.mrf.mxu0  ;;  %4204 = vmatmul.mubr.msk.f32.gmra.mxu0 %vm786_vm2, %v3517_v50  ;;  %4278 = vmatprep.mubr.msk.f32.mxu1 %vm4400_vm0, %v4399_v5 }
 0x250   :  { %4239 = vmatprep.mubr.msk.f32.mxu0 %vm4400_vm0, %v4399_v5  ;;  %v1001_v24 = vadd.f32 %v5024_v7, %v877_v51 }
 0x251   :  { %v3863_v54 = vpop.f32.mrf.mxu0 }
 0x252   :  { %4279 = vmatmul.mubr.msk.f32.gmra.mxu1 %vm786_vm2, %v3560_v52 }
 0x253   :  { %v882_v55 = vpop.f32.mrf.mxu0  ;;  %4240 = vmatmul.mubr.msk.f32.vlgmr.msra.gmra.mxu0 %vm786_vm2, %v3541_v53  ;;  %4281 = vmatprep.mubr.msk.f32.mxu1 %vm4400_vm0, %v4399_v5 }
 0x254   :  { %4242 = vmatprep.mubr.msk.f32.mxu0 %vm4400_vm0, %v4399_v5  ;;  %v1006_v32 = vadd.f32 %v5038_v11, %v882_v55 }
 0x255   :  { %v3866_v58 = vpop.f32.mrf.mxu0 }
 0x256   :  { %4282 = vmatmul.mubr.msk.f32.gmra.mxu1 %vm786_vm2, %v3561_v56 }
 0x257   :  { %v887_v59 = vpop.f32.mrf.mxu0  ;;  %4243 = vmatmul.mubr.msk.f32.gmra.mxu0 %vm786_vm2, %v3542_v57  ;;  %4284 = vmatprep.mubr.msk.f32.mxu1 %vm4400_vm0, %v4399_v5 }
 0x258   :  { %4245 = vmatprep.mubr.msk.f32.mxu0 %vm4400_vm0, %v4399_v5  ;;  %v1011_v39 = vadd.f32 %v5052_v15, %v887_v59 }
 0x259   :  { %v3869_v62 = vpop.f32.mrf.mxu0  ;;  %v1285_v63 = vpop.f32.mrf.mxu1 }
 0x25a   :  { %4285 = vmatmul.mubr.msk.f32.gmra.mxu1 %vm786_vm2, %v3562_v60 }
 0x25b   :  { %v892_v0 = vpop.f32.mrf.mxu0  ;;  %4246 = vmatmul.mubr.msk.f32.gmra.mxu0 %vm786_vm2, %v3543_v61  ;;  %v3944_v1 = vpop.f32.mrf.mxu1 }
 0x25c   :  { %4248 = vmatprep.mubr.msk.f32.mxu0 %vm4400_vm0, %v4399_v5  ;;  %v1016_v45 = vadd.f32 %v5074_v21, %v892_v0 }
 0x25d   :  { %v3872_v3 = vpop.f32.mrf.mxu0 }
 0x25e   :  { %v1290_v4 = vpop.f32.mrf.mxu1 }
 0x25f   :  { %v897_v6 = vpop.f32.mrf.mxu0  ;;  %4249 = vmatmul.mubr.msk.f32.gmra.mxu0 %vm786_vm2, %v3544_v2 }
 0x260   :  { %4251 = vmatprep.mubr.msk.f32.mxu0 %vm4400_vm0, %v4399_v5  ;;  %v3947_v9 = vpop.f32.mrf.mxu1  ;;  %v1021_v51 = vadd.f32 %v5090_v26, %v897_v6 }
 0x261   :  { %v3875_v10 = vpop.f32.mrf.mxu0 }
 0x262   :  { %v1295_v12 = vpop.f32.mrf.mxu1 }
 0x263   :  { %v902_v13 = vpop.f32.mrf.mxu0  ;;  %4252 = vmatmul.mubr.msk.f32.gmra.mxu0 %vm786_vm2, %v3545_v8 }
 0x264   :  { %4254 = vmatprep.mubr.msk.f32.mxu0 %vm4400_vm0, %v4399_v5  ;;  %v3950_v16 = vpop.f32.mrf.mxu1  ;;  %v1026_v57 = vadd.f32 %v5104_v31, %v902_v13 }
 0x265   :  { %v3878_v17 = vpop.f32.mrf.mxu0 }
 0x266   :  { %v1300_v18 = vpop.f32.mrf.mxu1 }
 0x267   :  { %v907_v19 = vpop.f32.mrf.mxu0  ;;  %4255 = vmatmul.mubr.msk.f32.gmra.mxu0 %vm786_vm2, %v3546_v14 }
 0x268   :  { %4257 = vmatprep.mubr.msk.f32.mxu0 %vm4400_vm0, %v4399_v5  ;;  %v3953_v22 = vpop.f32.mrf.mxu1 }
 0x269   :  { %v3881_v23 = vpop.f32.mrf.mxu0 }
 0x26a   :  { %v1305_v25 = vpop.f32.mrf.mxu1 }
 0x26b   :  { %v1139_v27 = vpop.f32.mrf.mxu0  ;;  %4258 = vmatmul.mubr.msk.f32.gmra.mxu0 %vm786_vm2, %v3547_v20 }
 0x26c   :  { %v1173_v28 = vadd.f32 %v1139_v27, %v1001_v24  ;;  %v3956_v29 = vpop.f32.mrf.mxu1 }
 0x26d   :  { %v3917_v30 = vpop.f32.mrf.mxu0 }
 0x26e   :  { %v1319_v33 = vadd.f32 %v1285_v63, %v1173_v28  ;;  %v1310_v34 = vpop.f32.mrf.mxu1  ;;  %v1031_v63 = vadd.f32 %v5121_v37, %v907_v19 }
 0x26f   :  { %v1144_v5 = vpop.f32.mrf.mxu0 }
 0x270   :  { %v1174_v35 = vadd.f32 %v1144_v5, %v1006_v32  ;;  %v3959_v36 = vpop.f32.mrf.mxu1 }
 0x271   :  { %v3920_v38 = vpop.f32.mrf.mxu0 }
 0x272   :  { %v1320_v40 = vadd.f32 %v1290_v4, %v1174_v35  ;;  %v1315_v41 = vpop.f32.mrf.mxu1 }
 0x273   :  { %v1149_v7 = vpop.f32.mrf.mxu0 }
 0x274   :  { %v1175_v42 = vadd.f32 %v1149_v7, %v1011_v39  ;;  %v3962_v43 = vpop.f32.mrf.mxu1 }
 0x275   :  { %v3923_v44 = vpop.f32.mrf.mxu0 }
 0x276   :  { %v1321_v46 = vadd.f32 %v1295_v12, %v1175_v42  ;;  %v1577_v47 = vpop.f32.mrf.mxu1 }
 0x277   :  { %v1154_v48 = vpop.f32.mrf.mxu0 }
 0x278   :  { %v1176_v11 = vadd.f32 %v1154_v48, %v1016_v45  ;;  %v3998_v49 = vpop.f32.mrf.mxu1 }
 0x279   :  { %v3926_v50 = vpop.f32.mrf.mxu0 }
 0x27a   :  { %v1322_v52 = vadd.f32 %v1300_v18, %v1176_v11  ;;  %v1582_v53 = vpop.f32.mrf.mxu1 }
 0x27b   :  { %v1159_v54 = vpop.f32.mrf.mxu0 }
 0x27c   :  { %v1177_v15 = vadd.f32 %v1159_v54, %v1021_v51  ;;  %v4001_v55 = vpop.f32.mrf.mxu1 }
 0x27d   :  { %v3929_v56 = vpop.f32.mrf.mxu0 }
 0x27e   :  { %v1323_v58 = vadd.f32 %v1305_v25, %v1177_v15  ;;  %v1587_v59 = vpop.f32.mrf.mxu1 }
 0x27f   :  { %v1164_v60 = vpop.f32.mrf.mxu0 }
 0x280   :  { %v1178_v21 = vadd.f32 %v1164_v60, %v1026_v57  ;;  %v4004_v61 = vpop.f32.mrf.mxu1 }
 0x281   :  { %v3932_v62 = vpop.f32.mrf.mxu0 }
 0x282   :  { %v1324_v0 = vadd.f32 %v1310_v34, %v1178_v21  ;;  %v1592_v1 = vpop.f32.mrf.mxu1 }
 0x283   :  { %v1169_v2 = vpop.f32.mrf.mxu0 }
 0x284   :  { %v1179_v26 = vadd.f32 %v1169_v2, %v1031_v63  ;;  %v4007_v3 = vpop.f32.mrf.mxu1 }
 0x285   :  { %v3935_v4 = vpop.f32.mrf.mxu0 }
 0x286   :  { %v1325_v6 = vadd.f32 %v1315_v41, %v1179_v26  ;;  %v1597_v8 = vpop.f32.mrf.mxu1 }
 0x287   :  { %v1431_v9 = vpop.f32.mrf.mxu0 }
 0x288   :  { %v1465_v10 = vadd.f32 %v1431_v9, %v1319_v33  ;;  %v4010_v12 = vpop.f32.mrf.mxu1 }
 0x289   :  { %v3971_v31 = vpop.f32.mrf.mxu0 }
 0x28a   :  { %v1611_v13 = vadd.f32 %v1577_v47, %v1465_v10  ;;  %v1602_v14 = vpop.f32.mrf.mxu1 }
 0x28b   :  { %v1436_v16 = vpop.f32.mrf.mxu0 }
 0x28c   :  { %v1466_v17 = vadd.f32 %v1436_v16, %v1320_v40  ;;  %v4013_v18 = vpop.f32.mrf.mxu1 }
 0x28d   :  { %v3974_v20 = vpop.f32.mrf.mxu0 }
 0x28e   :  { %v1612_v22 = vadd.f32 %v1582_v53, %v1466_v17  ;;  %v1607_v37 = vpop.f32.mrf.mxu1 }
 0x28f   :  { %v1441_v19 = vpop.f32.mrf.mxu0 }
 0x290   :  { %v1467_v23 = vadd.f32 %v1441_v19, %v1321_v46  ;;  %v4016_v24 = vpop.f32.mrf.mxu1 }
 0x291   :  { %v3977_v25 = vpop.f32.mrf.mxu0 }
 0x292   :  { %v1613_v27 = vadd.f32 %v1587_v59, %v1467_v23  ;;  %v1869_v28 = vpop.f32.mrf.mxu1 }
 0x293   :  { %v1446_v29 = vpop.f32.mrf.mxu0 }
 0x294   :  { %v1468_v30 = vadd.f32 %v1446_v29, %v1322_v52  ;;  %v4052_v32 = vpop.f32.mrf.mxu1 }
 0x295   :  { %v3980_v33 = vpop.f32.mrf.mxu0 }
 0x296   :  { %v1614_v34 = vadd.f32 %v1592_v1, %v1468_v30  ;;  %v1874_v5 = vpop.f32.mrf.mxu1 }
 0x297   :  { %v1451_v35 = vpop.f32.mrf.mxu0 }
 0x298   :  { %v1469_v36 = vadd.f32 %v1451_v35, %v1323_v58  ;;  %v4055_v38 = vpop.f32.mrf.mxu1 }
 0x299   :  { %v3983_v39 = vpop.f32.mrf.mxu0  ;;  %v3134_v38 = vld [vmem:[%s5570_s4] sm:$0xff] }
 0x29a   :  { %v1615_v40 = vadd.f32 %v1597_v8, %v1469_v36  ;;  %v1879_v41 = vpop.f32.mrf.mxu1  ;;  %4301 = vmatprep.mubr.msk.f32.mxu0 %vm3148_vm3, %v3134_v38 }
 0x29b   :  { %v1456_v7 = vpop.f32.mrf.mxu0 }
 0x29c   :  { %v1470_v42 = vadd.f32 %v1456_v7, %v1324_v0  ;;  %v4058_v43 = vpop.f32.mrf.mxu1 }
 0x29d   :  { %v3986_v44 = vpop.f32.mrf.mxu0 }
 0x29e   :  { %v1616_v45 = vadd.f32 %v1602_v14, %v1470_v42  ;;  %v1884_v46 = vpop.f32.mrf.mxu1 }
 0x29f   :  { %v1461_v47 = vpop.f32.mrf.mxu0 }
 0x2a0   :  { %v1471_v48 = vadd.f32 %v1461_v47, %v1325_v6  ;;  %v4061_v11 = vpop.f32.mrf.mxu1 }
 0x2a1   :  { %v3989_v49 = vpop.f32.mrf.mxu0 }
 0x2a2   :  { %v1617_v50 = vadd.f32 %v1607_v37, %v1471_v48  ;;  %v1889_v51 = vpop.f32.mrf.mxu1 }
 0x2a3   :  { %v1723_v52 = vpop.f32.mrf.mxu0 }
 0x2a4   :  { %v1757_v53 = vadd.f32 %v1723_v52, %v1611_v13  ;;  %v4064_v54 = vpop.f32.mrf.mxu1 }
 0x2a5   :  { %v4025_v15 = vpop.f32.mrf.mxu0 }
 0x2a6   :  { %v1903_v55 = vadd.f32 %v1869_v28, %v1757_v53  ;;  %v1894_v56 = vpop.f32.mrf.mxu1 }
 0x2a7   :  { %v1728_v57 = vpop.f32.mrf.mxu0 }
 0x2a8   :  { %v1758_v58 = vadd.f32 %v1728_v57, %v1612_v22  ;;  %v4067_v59 = vpop.f32.mrf.mxu1 }
 0x2a9   :  { %v4028_v60 = vpop.f32.mrf.mxu0 }
 0x2aa   :  { %v1904_v21 = vadd.f32 %v1874_v5, %v1758_v58  ;;  %v1899_v61 = vpop.f32.mrf.mxu1 }
 0x2ab   :  { %v1733_v62 = vpop.f32.mrf.mxu0 }
 0x2ac   :  { %v1759_v63 = vadd.f32 %v1733_v62, %v1613_v27  ;;  %v4070_v0 = vpop.f32.mrf.mxu1 }
 0x2ad   :  { %v4031_v1 = vpop.f32.mrf.mxu0 }
 0x2ae   :  { %v1905_v2 = vadd.f32 %v1879_v41, %v1759_v63  ;;  %v2161_v26 = vpop.f32.mrf.mxu1 }
 0x2af   :  { %v1738_v3 = vpop.f32.mrf.mxu0 }
 0x2b0   :  { %v1760_v4 = vadd.f32 %v1738_v3, %v1614_v34  ;;  %v4106_v6 = vpop.f32.mrf.mxu1 }
 0x2b1   :  { %v4034_v8 = vpop.f32.mrf.mxu0 }
 0x2b2   :  { %v1906_v9 = vadd.f32 %v1884_v46, %v1760_v4  ;;  %v2166_v10 = vpop.f32.mrf.mxu1 }
 0x2b3   :  { %v1743_v12 = vpop.f32.mrf.mxu0 }
 0x2b4   :  { %v1761_v31 = vadd.f32 %v1743_v12, %v1615_v40  ;;  %v4109_v13 = vpop.f32.mrf.mxu1 }
 0x2b5   :  { %v4037_v14 = vpop.f32.mrf.mxu0 }
 0x2b6   :  { %v1907_v16 = vadd.f32 %v1889_v51, %v1761_v31  ;;  %v2171_v17 = vpop.f32.mrf.mxu1 }
 0x2b7   :  { %v1748_v18 = vpop.f32.mrf.mxu0 }
 0x2b8   :  { %v1762_v20 = vadd.f32 %v1748_v18, %v1616_v45  ;;  %v4112_v22 = vpop.f32.mrf.mxu1 }
 0x2b9   :  { %v4040_v37 = vpop.f32.mrf.mxu0 }
 0x2ba   :  { %v1908_v19 = vadd.f32 %v1894_v56, %v1762_v20  ;;  %v2176_v23 = vpop.f32.mrf.mxu1 }
 0x2bb   :  { %v1753_v24 = vpop.f32.mrf.mxu0 }
 0x2bc   :  { %v1763_v25 = vadd.f32 %v1753_v24, %v1617_v50  ;;  %v4115_v27 = vpop.f32.mrf.mxu1 }
 0x2bd   :  { %v4043_v28 = vpop.f32.mrf.mxu0 }
 0x2be   :  { %v1909_v29 = vadd.f32 %v1899_v61, %v1763_v25  ;;  %v2181_v30 = vpop.f32.mrf.mxu1 }
 0x2bf   :  { %v2015_v32 = vpop.f32.mrf.mxu0 }
 0x2c0   :  { %v2049_v33 = vadd.f32 %v2015_v32, %v1903_v55  ;;  %v4118_v34 = vpop.f32.mrf.mxu1 }
 0x2c1   :  { %v4079_v5 = vpop.f32.mrf.mxu0 }
 0x2c2   :  { %v2195_v35 = vadd.f32 %v2161_v26, %v2049_v33  ;;  %v2186_v36 = vpop.f32.mrf.mxu1 }
 0x2c3   :  { %v2020_v39 = vpop.f32.mrf.mxu0 }
 0x2c4   :  { %v2050_v40 = vadd.f32 %v2020_v39, %v1904_v21  ;;  %v4121_v41 = vpop.f32.mrf.mxu1 }
 0x2c5   :  { %v4082_v7 = vpop.f32.mrf.mxu0 }
 0x2c6   :  { %v2196_v42 = vadd.f32 %v2166_v10, %v2050_v40  ;;  %v2191_v43 = vpop.f32.mrf.mxu1 }
 0x2c7   :  { %v2025_v44 = vpop.f32.mrf.mxu0 }
 0x2c8   :  { %v2051_v45 = vadd.f32 %v2025_v44, %v1905_v2  ;;  %v4124_v46 = vpop.f32.mrf.mxu1 }
 0x2c9   :  { %v4085_v47 = vpop.f32.mrf.mxu0 }
 0x2ca   :  { %v2197_v48 = vadd.f32 %v2171_v17, %v2051_v45  ;;  %v2453_v11 = vpop.f32.mrf.mxu1 }
 0x2cb   :  { %v2030_v49 = vpop.f32.mrf.mxu0 }
 0x2cc   :  { %v2052_v50 = vadd.f32 %v2030_v49, %v1906_v9  ;;  %v4160_v51 = vpop.f32.mrf.mxu1 }
 0x2cd   :  { %v4088_v52 = vpop.f32.mrf.mxu0 }
 0x2ce   :  { %v2198_v53 = vadd.f32 %v2176_v23, %v2052_v50  ;;  %v2458_v54 = vpop.f32.mrf.mxu1 }
 0x2cf   :  { %v2035_v15 = vpop.f32.mrf.mxu0 }
 0x2d0   :  { %v2053_v55 = vadd.f32 %v2035_v15, %v1907_v16  ;;  %v4163_v56 = vpop.f32.mrf.mxu1 }
 0x2d1   :  { %v4091_v57 = vpop.f32.mrf.mxu0 }
 0x2d2   :  { %v2199_v58 = vadd.f32 %v2181_v30, %v2053_v55  ;;  %v2463_v59 = vpop.f32.mrf.mxu1 }
 0x2d3   :  { %v2040_v60 = vpop.f32.mrf.mxu0 }
 0x2d4   :  { %v2054_v21 = vadd.f32 %v2040_v60, %v1908_v19  ;;  %v4166_v61 = vpop.f32.mrf.mxu1 }
 0x2d5   :  { %v4094_v62 = vpop.f32.mrf.mxu0 }
 0x2d6   :  { %v2200_v63 = vadd.f32 %v2186_v36, %v2054_v21  ;;  %v2468_v0 = vpop.f32.mrf.mxu1 }
 0x2d7   :  { %v2045_v1 = vpop.f32.mrf.mxu0 }
 0x2d8   :  { %v2055_v2 = vadd.f32 %v2045_v1, %v1909_v29  ;;  %v4169_v26 = vpop.f32.mrf.mxu1 }
 0x2d9   :  { %v4097_v3 = vpop.f32.mrf.mxu0 }
 0x2da   :  { %v2201_v4 = vadd.f32 %v2191_v43, %v2055_v2  ;;  %v2473_v6 = vpop.f32.mrf.mxu1 }
 0x2db   :  { %v2307_v8 = vpop.f32.mrf.mxu0 }
 0x2dc   :  { %v2341_v9 = vadd.f32 %v2307_v8, %v2195_v35  ;;  %v4172_v10 = vpop.f32.mrf.mxu1 }
 0x2dd   :  { %v4133_v12 = vpop.f32.mrf.mxu0 }
 0x2de   :  { %v2487_v31 = vadd.f32 %v2453_v11, %v2341_v9  ;;  %v2478_v13 = vpop.f32.mrf.mxu1 }
 0x2df   :  { %v2312_v14 = vpop.f32.mrf.mxu0 }
 0x2e0   :  { %v2342_v16 = vadd.f32 %v2312_v14, %v2196_v42  ;;  %v4175_v17 = vpop.f32.mrf.mxu1 }
 0x2e1   :  { %v4136_v18 = vpop.f32.mrf.mxu0 }
 0x2e2   :  { %v2488_v20 = vadd.f32 %v2458_v54, %v2342_v16  ;;  %v2483_v22 = vpop.f32.mrf.mxu1 }
 0x2e3   :  { %v2317_v37 = vpop.f32.mrf.mxu0 }
 0x2e4   :  { %v2343_v19 = vadd.f32 %v2317_v37, %v2197_v48  ;;  %v4178_v23 = vpop.f32.mrf.mxu1 }
 0x2e5   :  { %v4139_v24 = vpop.f32.mrf.mxu0 }
 0x2e6   :  { %v2489_v25 = vadd.f32 %v2463_v59, %v2343_v19  ;;  %v2745_v27 = vpop.f32.mrf.mxu1 }
 0x2e7   :  { %v2322_v28 = vpop.f32.mrf.mxu0 }
 0x2e8   :  { %v2344_v29 = vadd.f32 %v2322_v28, %v2198_v53  ;;  %v4214_v30 = vpop.f32.mrf.mxu1 }
 0x2e9   :  { %v4142_v32 = vpop.f32.mrf.mxu0 }
 0x2ea   :  { %v5531_v33 = vadd.f32 %v2468_v0, %v2344_v29  ;;  %v2750_v34 = vpop.f32.mrf.mxu1 }
 0x2eb   :  { %v2327_v5 = vpop.f32.mrf.mxu0 }
 0x2ec   :  { %v2345_v35 = vadd.f32 %v2327_v5, %v2199_v58  ;;  %v4217_v36 = vpop.f32.mrf.mxu1 }
 0x2ed   :  { %v4145_v38 = vpop.f32.mrf.mxu0 }
 0x2ee   :  { %v5533_v39 = vadd.f32 %v2473_v6, %v2345_v35  ;;  %v2755_v40 = vpop.f32.mrf.mxu1  ;;  %v3118_v38 = vpop.permute.xlu1 %3117 }
 0x2ef   :  { %v2332_v41 = vpop.f32.mrf.mxu0 }
 0x2f0   :  { %v2346_v7 = vadd.f32 %v2332_v41, %v2200_v63  ;;  %v4220_v42 = vpop.f32.mrf.mxu1 }
 0x2f1   :  { %v4148_v43 = vpop.f32.mrf.mxu0 }
 0x2f2   :  { %v2492_v44 = vadd.f32 %v2478_v13, %v2346_v7  ;;  %v5535_v45 = vpop.f32.mrf.mxu1 }
 0x2f3   :  { %v2337_v46 = vpop.f32.mrf.mxu0 }
 0x2f4   :  { %v2347_v47 = vadd.f32 %v2337_v46, %v2201_v4  ;;  %v4223_v48 = vpop.f32.mrf.mxu1 }
 0x2f5   :  { %v4151_v11 = vpop.f32.mrf.mxu0 }
 0x2f6   :  { %v2493_v49 = vadd.f32 %v2483_v22, %v2347_v47  ;;  %v2765_v50 = vpop.f32.mrf.mxu1 }
 0x2f7   :  { %v2599_v51 = vpop.f32.mrf.mxu0 }
 0x2f8   :  { %v2633_v52 = vadd.f32 %v2599_v51, %v2487_v31  ;;  %v4226_v53 = vpop.f32.mrf.mxu1  ;;  %v3108_v51 = vpop.permute.xlu1 %3107 }
 0x2f9   :  { %v4187_v54 = vpop.f32.mrf.mxu0 }
 0x2fa   :  { %v5537_v15 = vadd.f32 %v2745_v27, %v2633_v52  ;;  %v2770_v55 = vpop.f32.mrf.mxu1 }
 0x2fb   :  { %v2604_v56 = vpop.f32.mrf.mxu0 }
 0x2fc   :  { %v2634_v57 = vadd.f32 %v2604_v56, %v2488_v20  ;;  %v4229_v58 = vpop.f32.mrf.mxu1 }
 0x2fd   :  { %v4190_v59 = vpop.f32.mrf.mxu0 }
 0x2fe   :  { %v5539_v60 = vadd.f32 %v2750_v34, %v2634_v57  ;;  %v2775_v21 = vpop.f32.mrf.mxu1  ;;  %v3113_v57 = vpop.permute.xlu0 %3112 }
 0x2ff   :  { %v2609_v61 = vpop.f32.mrf.mxu0 }
 0x300   :  { %v2635_v62 = vadd.f32 %v2609_v61, %v2489_v25  ;;  %v4232_v63 = vpop.f32.mrf.mxu1 }
 0x301   :  { %v4193_v0 = vpop.f32.mrf.mxu0 }
 0x302   :  { %v2781_v1 = vadd.f32 %v2755_v40, %v2635_v62  ;;  %v5541_v2 = vpop.f32.mrf.mxu1 }
 0x303   :  { %v2614_v26 = vpop.f32.mrf.mxu0 }
 0x304   :  { %v4268_v3 = vpop.f32.mrf.mxu1  ;;  %v2636_v42 = vadd.f32 %v2614_v26, %v5531_v33 }
 0x305   :  { %v4196_v4 = vpop.f32.mrf.mxu0  ;;  %v3098_v3 = vpop.permute.xlu0 %3097 }
 0x306   :  { %v3042_v6 = vpop.f32.mrf.mxu1  ;;  %v2782_v53 = vadd.f32 %v5535_v45, %v2636_v42 }
 0x307   :  { %v2619_v8 = vpop.f32.mrf.mxu0 }
 0x308   :  { %v4271_v9 = vpop.f32.mrf.mxu1  ;;  %v2637_v41 = vadd.f32 %v2619_v8, %v5533_v39 }
 0x309   :  { %v4199_v10 = vpop.f32.mrf.mxu0 }
 0x30a   :  { %v3047_v12 = vpop.f32.mrf.mxu1  ;;  %v2783_v48 = vadd.f32 %v2765_v50, %v2637_v41 }
 0x30b   :  { %v2624_v31 = vpop.f32.mrf.mxu0 }
 0x30c   :  { %v4274_v13 = vpop.f32.mrf.mxu1  ;;  %v2638_v36 = vadd.f32 %v2624_v31, %v2492_v44 }
 0x30d   :  { %v4202_v14 = vpop.f32.mrf.mxu0 }
 0x30e   :  { %v3052_v16 = vpop.f32.mrf.mxu1  ;;  %v2784_v43 = vadd.f32 %v2770_v55, %v2638_v36  ;;  %v3103_v55 = vpop.permute.xlu1 %3102 }
 0x30f   :  { %v2629_v17 = vpop.f32.mrf.mxu0 }
 0x310   :  { %v4277_v18 = vpop.f32.mrf.mxu1  ;;  %v2639_v46 = vadd.f32 %v2629_v17, %v2493_v49 }
 0x311   :  { %v4205_v20 = vpop.f32.mrf.mxu0 }
 0x312   :  { %v3057_v22 = vpop.f32.mrf.mxu1  ;;  %v2785_v54 = vadd.f32 %v2775_v21, %v2639_v46 }
 0x313   :  { %v2891_v37 = vpop.f32.mrf.mxu0 }
 0x314   :  { %v4280_v19 = vpop.f32.mrf.mxu1  ;;  %v2925_v45 = vadd.f32 %v2891_v37, %v5537_v15 }
 0x315   :  { %v4241_v23 = vpop.f32.mrf.mxu0 }
 0x316   :  { %v3062_v24 = vpop.f32.mrf.mxu1  ;;  %v3071_v13 = vadd.f32 %v5541_v2, %v2925_v45  ;;  %v3135_v2 = vld [vmem:[%s5570_s4 + $0x8] sm:$0x3] }
 0x317   :  { %v2896_v25 = vpop.f32.mrf.mxu0 }
 0x318   :  { %v4283_v27 = vpop.f32.mrf.mxu1  ;;  %v2926_v49 = vadd.f32 %v2896_v25, %v5539_v60 }
 0x319   :  { %v4244_v28 = vpop.f32.mrf.mxu0 }
 0x31a   :  { %v3067_v29 = vpop.f32.mrf.mxu1  ;;  %v3072_v9 = vadd.f32 %v3042_v6, %v2926_v49 }
 0x31b   :  { %v2901_v30 = vpop.f32.mrf.mxu0 }
 0x31c   :  { %v4286_v32 = vpop.f32.mrf.mxu1  ;;  %v2927_v62 = vadd.f32 %v2901_v30, %v2781_v1  ;;  %v3093_v1 = vpop.permute.xlu1 %3092 }
 0x31d   :  { %v4247_v34 = vpop.f32.mrf.mxu0  ;;  %v3121_v17 = vadd.f32 %v3093_v1, %v3072_v9 }
 0x31e   :  { %v3073_v21 = vadd.f32 %v3047_v12, %v2927_v62 }
 0x31f   :  { %v2906_v5 = vpop.f32.mrf.mxu0  ;;  %v3128_v6 = vmax.f32 %v3121_v17, 0.0 }
 0x320   :  { %v2928_v58 = vadd.f32 %v2906_v5, %v2782_v53  ;;  %v3122_v14 = vadd.f32 %v3098_v3, %v3073_v21  ;;  %v3141_v23 = vpop.permute.xlu1 %3140 }
 0x321   :  { %v4250_v35 = vpop.f32.mrf.mxu0 }
 0x322   :  { %v3074_v50 = vadd.f32 %v3052_v16, %v2928_v58  ;;  %v3088_v16 = vpop.permute.xlu0 %3087  ;;  %v3129_v12 = vmax.f32 %v3122_v14, 0.0 }
 0x323   :  { %v2911_v40 = vpop.f32.mrf.mxu0  ;;  %v3120_v15 = vadd.f32 %v3088_v16, %v3071_v13 }
 0x324   :  { %v2929_v56 = vadd.f32 %v2911_v40, %v2783_v48  ;;  %v3123_v10 = vadd.f32 %v3103_v55, %v3074_v50 }
 0x325   :  { %v4253_v7 = vpop.f32.mrf.mxu0  ;;  %v3127_v20 = vmax.f32 %v3120_v15, 0.0 }
 0x326   :  { %v3075_v63 = vadd.f32 %v3057_v22, %v2929_v56  ;;  %v3130_v18 = vmax.f32 %v3123_v10, 0.0  ;;  %v3146_v22 = vpop.permute.xlu0 %3145 }
 0x327   :  { %v2916_v47 = vpop.f32.mrf.mxu0 }
 0x328   :  { %v2930_v11 = vadd.f32 %v2916_v47, %v2784_v43  ;;  %v3124_v4 = vadd.f32 %v3108_v51, %v3075_v63 }
 0x329   :  { %v4256_v52 = vpop.f32.mrf.mxu0 }
 0x32a   :  { %v3076_v59 = vadd.f32 %v3062_v24, %v2930_v11  ;;  %v3131_v60 = vmax.f32 %v3124_v4, 0.0 }
 0x32b   :  { %v2921_v44 = vpop.f32.mrf.mxu0 }
 0x32c   :  { %v2931_v61 = vadd.f32 %v2921_v44, %v2785_v54  ;;  %v3125_v0 = vadd.f32 %v3113_v57, %v3076_v59 }
 0x32d   :  { %v4259_v39 = vpop.f32.mrf.mxu0 }
 0x32e   :  { %v3077_v33 = vadd.f32 %v3067_v29, %v2931_v61  ;;  %v3132_v31 = vmax.f32 %v3125_v0, 0.0 }
 0x330   :  { %v3126_v26 = vadd.f32 %v3118_v38, %v3077_v33 }
 0x332   :  { %v3133_v8 = vmax.f32 %v3126_v26, 0.0 }
 0x334   :  { %4287 = vmatprep.subr.msk.mxu0 %vm3155_vm4, %v3133_v8 }
 0x335   :  { %4288 = vmatpush3.msk.msra.mxu0 %vm3155_vm4, %v3133_v8 }
 0x336   :  { %4289 = vmatprep.subr.mxu0 %v3132_v31 }
 0x337   :  { %4290 = vmatpush3.msra.mxu0 %v3132_v31 }
 0x338   :  { %4291 = vmatprep.subr.mxu0 %v3131_v60 }
 0x339   :  { %4292 = vmatpush3.msra.mxu0 %v3131_v60 }
 0x33a   :  { %4293 = vmatprep.subr.mxu0 %v3130_v18 }
 0x33b   :  { %4294 = vmatpush3.msra.mxu0 %v3130_v18 }
 0x33c   :  { %4295 = vmatprep.subr.mxu0 %v3129_v12 }
 0x33d   :  { %4296 = vmatpush3.msra.mxu0 %v3129_v12 }
 0x33e   :  { %4297 = vmatprep.subr.mxu0 %v3128_v6 }
 0x33f   :  { %4298 = vmatpush3.msra.mxu0 %v3128_v6 }
 0x340   :  { %4299 = vmatprep.subr.mxu0 %v3127_v20 }
 0x341   :  { %4300 = vmatpush3.msra.mxu0 %v3127_v20 }
 0x342   :  { %4302 = vmatmul.mubr.msk.f32.vlgmr.msra.gmra.mxu0 %vm3148_vm3, %v3135_v2 }
 0x402   :  { %v4303_v37 = vpop.f32.mrf.mxu0 }
 0x403   :  { %v3231_v19 = vadd.f32 %v4303_v37, %v3146_v22 }
 0x404   :  { %v3225_v24 = vpop.f32.mrf.mxu0 }
 0x405   :  { %v3226_v25 = vadd.f32 %v3225_v24, %v3141_v23  ;;  %v3237_v27 = vsel %vm3236_vm5, %v3231_v19, -inf }
 0x407   :  { %v3235_v28 = vsel %vm3234_vm6, %v3226_v25, -inf }
 0x408   :  { %v3238_v29 = vmax.f32 %v3235_v28, %v3237_v27 }
 0x40a   :  { %v3239_v30 = vrot.slane %v3238_v29, 4 }
 0x40c   :  { %v3240_v32 = vmax.f32 %v3238_v29, %v3239_v30 }
 0x40e   :  { %v3241_v34 = vrot.slane %v3240_v32, 2 }
 0x410   :  { %v3242_v5 = vmax.f32 %v3240_v32, %v3241_v34 }
 0x412   :  { %v3243_v35 = vrot.slane %v3242_v5, 1 }
 0x414   :  { %v3244_v36 = vmax.f32 %v3242_v5, %v3243_v35 }
 0x416   :  { %v3245_v38 = vsub.f32 %v3226_v25, %v3244_v36  ;;  %v3246_v40 = vsub.f32 %v3231_v19, %v3244_v36 }
 0x418   :  { %v3247_v41 = vmul.f32 1.442695, %v3245_v38  ;;  %v3249_v7 = vmul.f32 1.442695, %v3246_v40 }
 0x41a   :  { %4393 = vpow2.f32 %v3247_v41 }
 0x41b   :  { %4395 = vpow2.f32 %v3249_v7 }
 0x427   :  { %v4394_v42 = vpop.eup %4393 }
 0x428   :  { %v4396_v43 = vpop.eup %4395  ;;  %v3251_v46 = vsel %vm3234_vm6, %v4394_v42, 0.0 }
 0x429   :  { %v3252_v47 = vsel %vm3236_vm5, %v4396_v43, 0.0 }
 0x42a   :  { %v3253_v48 = vadd.f32 %v3252_v47, %v3251_v46 }
 0x42c   :  { %v3254_v11 = vrot.slane %v3253_v48, 4 }
 0x42e   :  { %v3255_v51 = vadd.f32 %v3254_v11, %v3253_v48 }
 0x430   :  { %v3256_v52 = vrot.slane %v3255_v51, 2 }
 0x432   :  { %v3257_v53 = vadd.f32 %v3256_v52, %v3255_v51 }
 0x434   :  { %v3258_v54 = vrot.slane %v3257_v53, 1 }
 0x436   :  { %v3259_v56 = vadd.f32 %v3258_v54, %v3257_v53 }
 0x438   :  { %4397 = vlog2.f32 %v3259_v56 }
 0x445   :  { %v4398_v57 = vpop.eup %4397 }
 0x446   :  { %v3261_v44 = vmul.f32 0.6931472, %v4398_v57 }
 0x448   :  { %v3262_v58 = vsub.f32 %v3245_v38, %v3261_v44  ;;  %v3263_v59 = vsub.f32 %v3246_v40, %v3261_v44 }
 0x44a   :  { %3264 = vst.msk [vmem:[%s5571_s6] sm:$0xff] %vm3234_vm6, %v3262_v58 }
 0x44b   :  { %3265 = vst.msk [vmem:[%s5571_s6 + $0x8] sm:$0x3] %vm3236_vm5, %v3263_v59 }

</bundles_post_ra>
